<compile_context>
chip_gen: v5e
topology: v5e:2x2
jax: 0.10.0
libtpu: 0.0.40
codegen_flags: <defaults>
</compile_context>

<pallas_src>
import numpy as np

import jax
import jax.numpy as jnp
from jax.experimental import pallas as pl
from jax.experimental.pallas import tpu as pltpu


# ----------------------------- static geometry -------------------------------

def _conv_out_hw(h, w, k, s, p):
    return (h + 2 * p - k) // s + 1, (w + 2 * p - k) // s + 1


def _conv_geometry(image_shape, channels, kernel_sizes, strides, paddings):
    c, h, w = image_shape
    geos = []
    cin = c
    for cout, k, s, p in zip(channels, kernel_sizes, strides, paddings):
        ho, wo = _conv_out_hw(h, w, k, s, p)
        geos.append(dict(cin=cin, cout=cout, k=k, s=s, p=p,
                         hin=h, win=w, ho=ho, wo=wo))
        cin, h, w = cout, ho, wo
    return geos


# ------------------------------ parameter init -------------------------------

def init_raw_params(key, image_shape, channels, kernel_sizes, strides,
                    paddings, hidden_sizes, output_size):
    """Random params in torch layout (Conv2d: [Cout,Cin,KH,KW]; Linear stored
    as [in,out]) with torch's U(-1/sqrt(fan_in), 1/sqrt(fan_in)) init."""
    geos = _conv_geometry(image_shape, channels, kernel_sizes, strides, paddings)
    params = {"conv": [], "mlp": []}
    for g in geos:
        key, k1, k2 = jax.random.split(key, 3)
        scale = 1.0 / np.sqrt(g["cin"] * g["k"] * g["k"])
        params["conv"].append({
            "w": jax.random.uniform(k1, (g["cout"], g["cin"], g["k"], g["k"]),
                                    jnp.float32, -scale, scale),
            "b": jax.random.uniform(k2, (g["cout"],), jnp.float32, -scale, scale),
        })
    conv_out_size = geos[-1]["ho"] * geos[-1]["wo"] * geos[-1]["cout"]
    sizes = [conv_out_size] + list(hidden_sizes)
    layers = list(zip(sizes[:-1], sizes[1:]))
    mlp_relu_flags = [True] * len(layers)
    if output_size is not None:
        layers.append((sizes[-1], output_size))
        mlp_relu_flags.append(False)
    for fin, fout in layers:
        key, k1, k2 = jax.random.split(key, 3)
        scale = 1.0 / np.sqrt(fin)
        params["mlp"].append({
            "w": jax.random.uniform(k1, (fin, fout), jnp.float32, -scale, scale),
            "b": jax.random.uniform(k2, (fout,), jnp.float32, -scale, scale),
        })
    return params, mlp_relu_flags, geos


# ------------------------- init-time weight packing ---------------------------

def _pack_conv_gemm(w_oihw, stride, pad, hin, win):
    """Fold a whole Conv2d layer into one block-banded GEMM weight.

    Returns M of shape [Cin*Hin*Win, Cout*Ho*Wo] such that, for an input
    flattened in torch NCHW order, `x_flat @ M` equals the conv output
    flattened in NCHW order.  im2col gather + zero padding are baked in
    (taps reading padding are simply dropped -> zero rows contribute)."""
    w = np.asarray(w_oihw, np.float32)
    cout, cin, kh, kw = w.shape
    ho = (hin + 2 * pad - kh) // stride + 1
    wo = (win + 2 * pad - kw) // stride + 1
    mat = np.zeros((cin * hin * win, cout * ho * wo), np.float32)
    for co in range(cout):
        for ci in range(cin):
            for ki in range(kh):
                for kj in range(kw):
                    wv = w[co, ci, ki, kj]
                    for oh in range(ho):
                        ih = oh * stride + ki - pad
                        if not (0 <= ih < hin):
                            continue
                        for ow in range(wo):
                            iw = ow * stride + kj - pad
                            if not (0 <= iw < win):
                                continue
                            row = (ci * hin + ih) * win + iw
                            col = (co * ho + oh) * wo + ow
                            mat[row, col] = wv
    return mat


def pack_params(raw, geos, mlp_relu_flags):
    """Pack every layer (conv and linear) as a dense [K_j, N_j] GEMM weight,
    plus one shared bias buffer [n_layers, max_N] (zero padded)."""
    weights, biases, relus = [], [], []
    for layer, g in zip(raw["conv"], geos):
        mat = _pack_conv_gemm(layer["w"], g["s"], g["p"], g["hin"], g["win"])
        weights.append(jnp.asarray(mat))
        # per-channel bias broadcast to the NCHW-flat conv output
        biases.append(np.repeat(np.asarray(layer["b"], np.float32),
                                g["ho"] * g["wo"]))
        relus.append(True)
    for layer, rf in zip(raw["mlp"], mlp_relu_flags):
        weights.append(jnp.asarray(np.asarray(layer["w"], np.float32)))
        biases.append(np.asarray(layer["b"], np.float32))
        relus.append(bool(rf))
    max_n = max(b.shape[0] for b in biases)
    b_all = np.zeros((len(biases), max_n), np.float32)
    for j, b in enumerate(biases):
        b_all[j, :b.shape[0]] = b
    return weights, jnp.asarray(b_all), relus


# ------------------------------ fused Pallas kernel ---------------------------

def build_forward(weights, b_all, relus, batch, in_dim):
    n_layers = len(weights)
    assert n_layers >= 1, "identity head not supported"
    out_dims = [int(w.shape[1]) for w in weights]
    out_size = out_dims[-1]

    def kernel(*refs):
        x_ref = refs[0]
        w_refs = refs[1:1 + n_layers]
        b_ref = refs[1 + n_layers]
        o_ref = refs[2 + n_layers]

        b_full = b_ref[...]                       # [n_layers, max_N]
        h = x_ref[...]                            # [B, Cin*H*W] (flat NCHW)
        for j in range(n_layers):
            h = jnp.dot(h, w_refs[j][...],
                        preferred_element_type=jnp.float32)
            h = h + b_full[j, :out_dims[j]][None, :]
            if relus[j]:
                h = jnp.maximum(h, 0.0)
        o_ref[...] = h.astype(o_ref.dtype)

    vmem = pl.BlockSpec(memory_space=pltpu.MemorySpace.VMEM)
    flops = int(2 * batch * sum(int(w.shape[0]) * int(w.shape[1])
                                for w in weights))
    bytes_accessed = int(4 * (batch * in_dim
                              + sum(int(w.size) for w in weights)
                              + int(b_all.size)
                              + batch * out_size))
    call = pl.pallas_call(
        kernel,
        out_shape=jax.ShapeDtypeStruct((batch, out_size), jnp.float32),
        in_specs=[vmem] * (1 + n_layers + 1),
        out_specs=vmem,
        cost_estimate=pl.CostEstimate(flops=flops, transcendentals=0,
                                      bytes_accessed=bytes_accessed),
    )

    def forward(x_nchw):
        # Flat NCHW order -> pure (free) reshape; no transpose op per call.
        x = x_nchw.reshape(batch, in_dim)
        return call(x, *weights, b_all)

    return forward


# --------------------------- pure-JAX reference -------------------------------

def reference_forward(raw, mlp_relu_flags, strides, paddings, x_nchw):
    x = x_nchw
    for layer, s, p in zip(raw["conv"], strides, paddings):
        x = jax.lax.conv_general_dilated(
            x, layer["w"], window_strides=(s, s), padding=[(p, p), (p, p)],
            dimension_numbers=("NCHW", "OIHW", "NCHW"))
        x = jnp.maximum(x + layer["b"][None, :, None, None], 0.0)
    x = x.reshape(x.shape[0], -1)
    for layer, relu in zip(raw["mlp"], mlp_relu_flags):
        x = x @ layer["w"] + layer["b"]
        if relu:
            x = jnp.maximum(x, 0.0)
    return x


# ----------------------------------- main -------------------------------------

if __name__ == "__main__":
    image_shape = (4, 16, 16)          # (C, H, W)
    channels = [8, 16]
    kernel_sizes = [3, 3]
    strides = [2, 2]
    paddings = [1, 1]
    hidden_sizes = [32]
    output_size = 16
    batch = 2

    key = jax.random.PRNGKey(0)
    key, pkey, xkey = jax.random.split(key, 3)
    raw, mlp_relu_flags, geos = init_raw_params(
        pkey, image_shape, channels, kernel_sizes, strides, paddings,
        hidden_sizes, output_size)
    weights, b_all, relus = pack_params(raw, geos, mlp_relu_flags)
    in_dim = image_shape[0] * image_shape[1] * image_shape[2]
    forward = build_forward(weights, b_all, relus, batch, in_dim)

    x = jax.random.normal(xkey, (batch,) + image_shape, dtype=jnp.float32)

    fwd = jax.jit(forward)
    out = fwd(x)
    jax.block_until_ready(out)
    assert out.shape == (batch, output_size), out.shape

    # sanity check vs a pure-JAX/XLA reference of the torch forward
    ref = reference_forward(raw, mlp_relu_flags, strides, paddings, x)
    np.testing.assert_allclose(np.asarray(out), np.asarray(ref),
                               rtol=1e-4, atol=1e-4)
    print("KERNEL_OK")
</pallas_src>

<mosaic_0001>
module attributes {stable_mosaic.version = 11 : i64} {
  func.func @kernel(%arg0: memref<2x1024xf32, #tpu.memory_space<vmem>>, %arg1: memref<1024x512xf32, #tpu.memory_space<vmem>>, %arg2: memref<512x256xf32, #tpu.memory_space<vmem>>, %arg3: memref<256x32xf32, #tpu.memory_space<vmem>>, %arg4: memref<32x16xf32, #tpu.memory_space<vmem>>, %arg5: memref<4x512xf32, #tpu.memory_space<vmem>>, %arg6: memref<2x16xf32, #tpu.memory_space<vmem>>) attributes {dimension_semantics = [], scalar_prefetch = 0 : i64, scratch_operands = 0 : i64, tpu.core_type = #tpu.core_type<tc>} {
    %c0 = arith.constant 0 : index
    %c0_0 = arith.constant 0 : index
    %0 = vector.load %arg5[%c0, %c0_0] : memref<4x512xf32, #tpu.memory_space<vmem>>, vector<4x512xf32>
    %c0_1 = arith.constant 0 : index
    %c0_2 = arith.constant 0 : index
    %1 = vector.load %arg0[%c0_1, %c0_2] : memref<2x1024xf32, #tpu.memory_space<vmem>>, vector<2x1024xf32>
    %c0_3 = arith.constant 0 : index
    %c0_4 = arith.constant 0 : index
    %2 = vector.load %arg1[%c0_3, %c0_4] : memref<1024x512xf32, #tpu.memory_space<vmem>>, vector<1024x512xf32>
    %cst = arith.constant dense<0.000000e+00> : vector<2x512xf32>
    %3 = tpu.matmul %1, %2, %cst {dimension_numbers = #tpu.dot_dimension_numbers<[1], [0], [0], [1], [0, 0, 1, 1], [], []>} : vector<2x1024xf32>, vector<1024x512xf32>, vector<2x512xf32> -> vector<2x512xf32>
    %4 = vector.extract_strided_slice %0 {offsets = [0, 0], sizes = [1, 512], strides = [1, 1]} : vector<4x512xf32> to vector<1x512xf32>
    %5 = vector.shape_cast %4 : vector<1x512xf32> to vector<512xf32>
    %6 = vector.shape_cast %5 : vector<512xf32> to vector<1x512xf32>
    %7 = vector.broadcast %6 : vector<1x512xf32> to vector<2x512xf32>
    %8 = arith.addf %3, %7 : vector<2x512xf32>
    %cst_5 = arith.constant 0.000000e+00 : f32
    %9 = vector.broadcast %cst_5 : f32 to vector<2x512xf32>
    %10 = arith.maximumf %8, %9 : vector<2x512xf32>
    %c0_6 = arith.constant 0 : index
    %c0_7 = arith.constant 0 : index
    %11 = vector.load %arg2[%c0_6, %c0_7] : memref<512x256xf32, #tpu.memory_space<vmem>>, vector<512x256xf32>
    %cst_8 = arith.constant dense<0.000000e+00> : vector<2x256xf32>
    %12 = tpu.matmul %10, %11, %cst_8 {dimension_numbers = #tpu.dot_dimension_numbers<[1], [0], [0], [1], [0, 0, 1, 1], [], []>} : vector<2x512xf32>, vector<512x256xf32>, vector<2x256xf32> -> vector<2x256xf32>
    %13 = vector.extract_strided_slice %0 {offsets = [1, 0], sizes = [1, 256], strides = [1, 1]} : vector<4x512xf32> to vector<1x256xf32>
    %14 = vector.shape_cast %13 : vector<1x256xf32> to vector<256xf32>
    %15 = vector.shape_cast %14 : vector<256xf32> to vector<1x256xf32>
    %16 = vector.broadcast %15 : vector<1x256xf32> to vector<2x256xf32>
    %17 = arith.addf %12, %16 : vector<2x256xf32>
    %cst_9 = arith.constant 0.000000e+00 : f32
    %18 = vector.broadcast %cst_9 : f32 to vector<2x256xf32>
    %19 = arith.maximumf %17, %18 : vector<2x256xf32>
    %c0_10 = arith.constant 0 : index
    %c0_11 = arith.constant 0 : index
    %20 = vector.load %arg3[%c0_10, %c0_11] : memref<256x32xf32, #tpu.memory_space<vmem>>, vector<256x32xf32>
    %cst_12 = arith.constant dense<0.000000e+00> : vector<2x32xf32>
    %21 = tpu.matmul %19, %20, %cst_12 {dimension_numbers = #tpu.dot_dimension_numbers<[1], [0], [0], [1], [0, 0, 1, 1], [], []>} : vector<2x256xf32>, vector<256x32xf32>, vector<2x32xf32> -> vector<2x32xf32>
    %22 = vector.extract_strided_slice %0 {offsets = [2, 0], sizes = [1, 32], strides = [1, 1]} : vector<4x512xf32> to vector<1x32xf32>
    %23 = vector.shape_cast %22 : vector<1x32xf32> to vector<32xf32>
    %24 = vector.shape_cast %23 : vector<32xf32> to vector<1x32xf32>
    %25 = vector.broadcast %24 : vector<1x32xf32> to vector<2x32xf32>
    %26 = arith.addf %21, %25 : vector<2x32xf32>
    %cst_13 = arith.constant 0.000000e+00 : f32
    %27 = vector.broadcast %cst_13 : f32 to vector<2x32xf32>
    %28 = arith.maximumf %26, %27 : vector<2x32xf32>
    %c0_14 = arith.constant 0 : index
    %c0_15 = arith.constant 0 : index
    %29 = vector.load %arg4[%c0_14, %c0_15] : memref<32x16xf32, #tpu.memory_space<vmem>>, vector<32x16xf32>
    %cst_16 = arith.constant dense<0.000000e+00> : vector<2x16xf32>
    %30 = tpu.matmul %28, %29, %cst_16 {dimension_numbers = #tpu.dot_dimension_numbers<[1], [0], [0], [1], [0, 0, 1, 1], [], []>} : vector<2x32xf32>, vector<32x16xf32>, vector<2x16xf32> -> vector<2x16xf32>
    %31 = vector.extract_strided_slice %0 {offsets = [3, 0], sizes = [1, 16], strides = [1, 1]} : vector<4x512xf32> to vector<1x16xf32>
    %32 = vector.shape_cast %31 : vector<1x16xf32> to vector<16xf32>
    %33 = vector.shape_cast %32 : vector<16xf32> to vector<1x16xf32>
    %34 = vector.broadcast %33 : vector<1x16xf32> to vector<2x16xf32>
    %35 = arith.addf %30, %34 : vector<2x16xf32>
    %c0_17 = arith.constant 0 : index
    %c0_18 = arith.constant 0 : index
    %36 = vector.load %arg6[%c0_17, %c0_18] : memref<2x16xf32, #tpu.memory_space<vmem>>, vector<2x16xf32>
    tpu.vector_store %arg6[%c0_17, %c0_18], %35 {strides = array<i32>} : memref<2x16xf32, #tpu.memory_space<vmem>>, vector<2x16xf32>,
    return
  }
}

</mosaic_0001>

<bundles_post_ra>
// kernel: forward.1
= control target key start
LH: loop header
LB: loop body
LE: loop exit
PB: predicated region body
PF: predicated region fallthrough
CT: control target
= control target key end

     0   :  { %11 = vsyncpa [#allocation3], 0  ;;  %s2055_s0 = inlined_call_operand.vmem [shape: f32[2,1024], index: 0, kind: input, shape index: {}]   ;;  %s2056_s1 = inlined_call_operand.hbm [shape: f32[1024,512], index: 1, kind: input, shape index: {}]   ;;  %s2057_s2 = inlined_call_operand.hbm [shape: f32[512,256], index: 2, kind: input, shape index: {}]   ;;  %s2058_s3 = inlined_call_operand.hbm [shape: f32[256,32], index: 3, kind: input, shape index: {}]   ;;  %s2059_s4 = inlined_call_operand.hbm [shape: f32[32,16], index: 4, kind: input, shape index: {}]   ;;  %s2060_s5 = inlined_call_operand.hbm [shape: f32[4,512], index: 5, kind: input, shape index: {}]   ;;  %s2061_s6 = inlined_call_operand.hbm [shape: f32[2,16], index: 6, kind: output, shape index: {}]  }
   0x1   :  { %12 = vsyncpa [#allocation6], 0 }
   0x2   :  { %13 = vsyncpa [#allocation9], 0  ;;  %s34_s23 = sshll.u32 %s2057_s2, 4  ;;  %s35_s23 = int_to_ptr.hbm [resolvable:$true] %s34_s23 }
   0x3   :  { %14 = vsyncpa [#allocation4], 0  ;;  %s1888_s24 = smov [#allocation5]   ;;  %s1889_s26 = smov 256  }
   0x4   :  { %s36_s25 = sshll.u32 %s1888_s24, 4  ;;  %s1890_s27 = smov 16   ;;  %s37_s25 = int_to_ptr.vmem [resolvable:$true] %s36_s25 }
   0x5   :  { %42 = dma.hbm_to_vmem [thread:$0]  %s35_s23, 16384, %s37_s25, [#allocation6], %s1889_s26, %s1889_s26, %s1890_s27  }
   0x6   :  { %s60_s30 = sshll.u32 %s2059_s4, 4  ;;  %s1891_s7 = smov [#allocation8]   ;;  %s61_s30 = int_to_ptr.hbm [resolvable:$true] %s60_s30 }
   0x7   :  { %s62_s8 = sshll.u32 %s1891_s7, 4  ;;  %s21_s11 = sshll.u32 %s2056_s1, 4  ;;  %s63_s8 = int_to_ptr.vmem [resolvable:$true] %s62_s8  ;;  %s22_s11 = int_to_ptr.hbm [resolvable:$true] %s21_s11 }
   0x8   :  { %s1892_s2 = smov 128   ;;  %s1893_s12 = smov 8  }
   0x9   :  { %68 = dma.hbm_to_vmem [thread:$0]  %s61_s30, 512, %s63_s8, [#allocation9], %s1892_s2, %s1892_s2, %s1893_s12  }
   0xa   :  { %s1894_s13 = smov [#allocation2]   ;;  %s47_s17 = sshll.u32 %s2058_s3, 4  ;;  %s48_s17 = int_to_ptr.hbm [resolvable:$true] %s47_s17 }
   0xb   :  { %s23_s14 = sshll.u32 %s1894_s13, 4  ;;  %s1895_s4 = smov 512   ;;  %s24_s14 = int_to_ptr.vmem [resolvable:$true] %s23_s14 }
   0xc   :  { %s1896_s18 = smov 32   ;;  %s1897_s19 = smov [#allocation7]  }
   0xd   :  { %29 = dma.hbm_to_vmem [thread:$0]  %s22_s11, 65536, %s24_s14, [#allocation3], %s1895_s4, %s1895_s4, %s1896_s18  }
   0xe   :  { %s49_s20 = sshll.u32 %s1897_s19, 4  ;;  %s74_s22 = sshll.u32 %s2060_s5, 4  ;;  %s50_s20 = int_to_ptr.vmem [resolvable:$true] %s49_s20  ;;  %s75_s22 = int_to_ptr.hbm [resolvable:$true] %s74_s22 }
   0xf   :  { %55 = dma.hbm_to_vmem [thread:$0]  %s48_s17, 4096, %s50_s20, [#allocation6], %s1892_s2, %s1892_s2, %s1893_s12  }
  0x10   :  { %s1898_s23 = smov [#allocation10]  }
  0x11   :  { %s76_s24 = sshll.u32 %s1898_s23, 4  ;;  %s77_s24 = int_to_ptr.vmem [resolvable:$true] %s76_s24 }
  0x12   :  { %79 = dma.hbm_to_vmem [thread:$0]  %s75_s22, 256, %s77_s24, [#allocation9]  }
  0x13   :  { %1880 = dma.done.wait [#allocation3], 65536  }
  0x14   :  { %1881 = vsyncadd [#allocation3], 4294901760 }
  0x15   :  { %1882 = dma.done.wait [#allocation6], 20480  }
  0x16   :  { %1883 = vsyncadd [#allocation6], 4294946816 }
  0x17   :  { %1884 = dma.done.wait [#allocation9], 768  }
  0x18   :  { %1885 = vsyncadd [#allocation9], 4294966528  ;;  %v164_v0 = vld [vmem:[#allocation2 + $0x1e0] sm:$0xff]  ;;  %vm1670_vm0 = vcmask 261120   ;;  %s1703_s30 = sshll.u32 %s2061_s6, 4  ;;  %vm1694_vm1 = vcmask 123904   ;;  %s1704_s30 = int_to_ptr.hbm [resolvable:$true] %s1703_s30 }
  0x19   :  { %v228_v1 = vld [vmem:[#allocation2 + $0x3e0] sm:$0xff]  ;;  %651 = vmatpush.msra.mxu0 %v164_v0 }
  0x1a   :  { %v292_v2 = vld [vmem:[#allocation2 + $0x5e0] sm:$0xff]  ;;  %671 = vmatpush.msra.mxu1 %v228_v1 }
  0x1b   :  { %v160_v3 = vld [vmem:[#allocation2 + $0x1c0] sm:$0xff]  ;;  %691 = vmatpush.msra.mxu2 %v292_v2 }
  0x1c   :  { %v224_v4 = vld [vmem:[#allocation2 + $0x3c0] sm:$0xff]  ;;  %652 = vmatpush.msra.mxu0 %v160_v3 }
  0x1d   :  { %v288_v5 = vld [vmem:[#allocation2 + $0x5c0] sm:$0xff]  ;;  %672 = vmatpush.msra.mxu1 %v224_v4 }
  0x1e   :  { %v356_v6 = vld [vmem:[#allocation2 + $0x7e0] sm:$0xff]  ;;  %692 = vmatpush.msra.mxu2 %v288_v5 }
  0x1f   :  { %v156_v7 = vld [vmem:[#allocation2 + $0x1a0] sm:$0xff]  ;;  %711 = vmatpush.msra.mxu3 %v356_v6 }
  0x20   :  { %v220_v8 = vld [vmem:[#allocation2 + $0x3a0] sm:$0xff]  ;;  %653 = vmatpush.msra.mxu0 %v156_v7 }
  0x21   :  { %v284_v9 = vld [vmem:[#allocation2 + $0x5a0] sm:$0xff]  ;;  %673 = vmatpush.msra.mxu1 %v220_v8 }
  0x22   :  { %v352_v10 = vld [vmem:[#allocation2 + $0x7c0] sm:$0xff]  ;;  %693 = vmatpush.msra.mxu2 %v284_v9 }
  0x23   :  { %v152_v11 = vld [vmem:[#allocation2 + $0x180] sm:$0xff]  ;;  %712 = vmatpush.msra.mxu3 %v352_v10 }
  0x24   :  { %v216_v12 = vld [vmem:[#allocation2 + $0x380] sm:$0xff]  ;;  %654 = vmatpush.msra.mxu0 %v152_v11 }
  0x25   :  { %v280_v13 = vld [vmem:[#allocation2 + $0x580] sm:$0xff]  ;;  %674 = vmatpush.msra.mxu1 %v216_v12 }
  0x26   :  { %v348_v14 = vld [vmem:[#allocation2 + $0x7a0] sm:$0xff]  ;;  %694 = vmatpush.msra.mxu2 %v280_v13 }
  0x27   :  { %v148_v15 = vld [vmem:[#allocation2 + $0x160] sm:$0xff]  ;;  %713 = vmatpush.msra.mxu3 %v348_v14 }
  0x28   :  { %v212_v16 = vld [vmem:[#allocation2 + $0x360] sm:$0xff]  ;;  %655 = vmatpush.msra.mxu0 %v148_v15 }
  0x29   :  { %v276_v17 = vld [vmem:[#allocation2 + $0x560] sm:$0xff]  ;;  %675 = vmatpush.msra.mxu1 %v212_v16 }
  0x2a   :  { %v344_v18 = vld [vmem:[#allocation2 + $0x780] sm:$0xff]  ;;  %695 = vmatpush.msra.mxu2 %v276_v17 }
  0x2b   :  { %v144_v19 = vld [vmem:[#allocation2 + $0x140] sm:$0xff]  ;;  %714 = vmatpush.msra.mxu3 %v344_v18 }
  0x2c   :  { %v208_v20 = vld [vmem:[#allocation2 + $0x340] sm:$0xff]  ;;  %656 = vmatpush.msra.mxu0 %v144_v19 }
  0x2d   :  { %v272_v21 = vld [vmem:[#allocation2 + $0x540] sm:$0xff]  ;;  %676 = vmatpush.msra.mxu1 %v208_v20 }
  0x2e   :  { %v340_v22 = vld [vmem:[#allocation2 + $0x760] sm:$0xff]  ;;  %696 = vmatpush.msra.mxu2 %v272_v21 }
  0x2f   :  { %v140_v23 = vld [vmem:[#allocation2 + $0x120] sm:$0xff]  ;;  %715 = vmatpush.msra.mxu3 %v340_v22 }
  0x30   :  { %v204_v24 = vld [vmem:[#allocation2 + $0x320] sm:$0xff]  ;;  %657 = vmatpush.msra.mxu0 %v140_v23 }
  0x31   :  { %v268_v25 = vld [vmem:[#allocation2 + $0x520] sm:$0xff]  ;;  %677 = vmatpush.msra.mxu1 %v204_v24 }
  0x32   :  { %v336_v26 = vld [vmem:[#allocation2 + $0x740] sm:$0xff]  ;;  %697 = vmatpush.msra.mxu2 %v268_v25  ;;  %v102_v25 = vld [vmem:[%s2055_s0] sm:$0xff] }
  0x33   :  { %v136_v27 = vld [vmem:[#allocation2 + $0x100] sm:$0xff]  ;;  %716 = vmatpush.msra.mxu3 %v336_v26  ;;  %632 = vst [vmem:[#allocation1] ss:$4 sm:$0xff] %v102_v25  ;;  %v345_v25 = vld [vmem:[#allocation2 + $0x788] sm:$0xff] }
  0x34   :  { %v200_v28 = vld [vmem:[#allocation2 + $0x300] sm:$0xff]  ;;  %658 = vmatpush.msra.mxu0 %v136_v27 }
  0x35   :  { %v264_v29 = vld [vmem:[#allocation2 + $0x500] sm:$0xff]  ;;  %678 = vmatpush.msra.mxu1 %v200_v28 }
  0x36   :  { %v332_v30 = vld [vmem:[#allocation2 + $0x720] sm:$0xff]  ;;  %698 = vmatpush.msra.mxu2 %v264_v29 }
  0x37   :  { %v132_v31 = vld [vmem:[#allocation2 + $0xe0] sm:$0xff]  ;;  %717 = vmatpush.msra.mxu3 %v332_v30 }
  0x38   :  { %v196_v32 = vld [vmem:[#allocation2 + $0x2e0] sm:$0xff]  ;;  %659 = vmatpush.msra.mxu0 %v132_v31 }
  0x39   :  { %v260_v33 = vld [vmem:[#allocation2 + $0x4e0] sm:$0xff]  ;;  %679 = vmatpush.msra.mxu1 %v196_v32 }
  0x3a   :  { %v328_v34 = vld [vmem:[#allocation2 + $0x700] sm:$0xff]  ;;  %699 = vmatpush.msra.mxu2 %v260_v33 }
  0x3b   :  { %v128_v35 = vld [vmem:[#allocation2 + $0xc0] sm:$0xff]  ;;  %718 = vmatpush.msra.mxu3 %v328_v34 }
  0x3c   :  { %v192_v36 = vld [vmem:[#allocation2 + $0x2c0] sm:$0xff]  ;;  %660 = vmatpush.msra.mxu0 %v128_v35 }
  0x3d   :  { %v256_v37 = vld [vmem:[#allocation2 + $0x4c0] sm:$0xff]  ;;  %680 = vmatpush.msra.mxu1 %v192_v36 }
  0x3e   :  { %v324_v38 = vld [vmem:[#allocation2 + $0x6e0] sm:$0xff]  ;;  %700 = vmatpush.msra.mxu2 %v256_v37 }
  0x3f   :  { %v124_v39 = vld [vmem:[#allocation2 + $0xa0] sm:$0xff]  ;;  %719 = vmatpush.msra.mxu3 %v324_v38 }
  0x40   :  { %v188_v40 = vld [vmem:[#allocation2 + $0x2a0] sm:$0xff]  ;;  %661 = vmatpush.msra.mxu0 %v124_v39 }
  0x41   :  { %v252_v41 = vld [vmem:[#allocation2 + $0x4a0] sm:$0xff]  ;;  %681 = vmatpush.msra.mxu1 %v188_v40 }
  0x42   :  { %v320_v42 = vld [vmem:[#allocation2 + $0x6c0] sm:$0xff]  ;;  %701 = vmatpush.msra.mxu2 %v252_v41 }
  0x43   :  { %v120_v43 = vld [vmem:[#allocation2 + $0x80] sm:$0xff]  ;;  %720 = vmatpush.msra.mxu3 %v320_v42 }
  0x44   :  { %v184_v44 = vld [vmem:[#allocation2 + $0x280] sm:$0xff]  ;;  %662 = vmatpush.msra.mxu0 %v120_v43 }
  0x45   :  { %v248_v45 = vld [vmem:[#allocation2 + $0x480] sm:$0xff]  ;;  %682 = vmatpush.msra.mxu1 %v184_v44 }
  0x46   :  { %v316_v46 = vld [vmem:[#allocation2 + $0x6a0] sm:$0xff]  ;;  %702 = vmatpush.msra.mxu2 %v248_v45 }
  0x47   :  { %v116_v47 = vld [vmem:[#allocation2 + $0x60] sm:$0xff]  ;;  %721 = vmatpush.msra.mxu3 %v316_v46 }
  0x48   :  { %v180_v48 = vld [vmem:[#allocation2 + $0x260] sm:$0xff]  ;;  %663 = vmatpush.msra.mxu0 %v116_v47 }
  0x49   :  { %v244_v49 = vld [vmem:[#allocation2 + $0x460] sm:$0xff]  ;;  %683 = vmatpush.msra.mxu1 %v180_v48 }
  0x4a   :  { %v312_v50 = vld [vmem:[#allocation2 + $0x680] sm:$0xff]  ;;  %703 = vmatpush.msra.mxu2 %v244_v49 }
  0x4b   :  { %v112_v51 = vld [vmem:[#allocation2 + $0x40] sm:$0xff]  ;;  %722 = vmatpush.msra.mxu3 %v312_v50 }
  0x4c   :  { %v176_v52 = vld [vmem:[#allocation2 + $0x240] sm:$0xff]  ;;  %664 = vmatpush.msra.mxu0 %v112_v51 }
  0x4d   :  { %v240_v53 = vld [vmem:[#allocation2 + $0x440] sm:$0xff]  ;;  %684 = vmatpush.msra.mxu1 %v176_v52 }
  0x4e   :  { %v308_v54 = vld [vmem:[#allocation2 + $0x660] sm:$0xff]  ;;  %704 = vmatpush.msra.mxu2 %v240_v53 }
  0x4f   :  { %v108_v55 = vld [vmem:[#allocation2 + $0x20] sm:$0xff]  ;;  %723 = vmatpush.msra.mxu3 %v308_v54 }
  0x50   :  { %v172_v56 = vld [vmem:[#allocation2 + $0x220] sm:$0xff]  ;;  %665 = vmatpush.msra.mxu0 %v108_v55 }
  0x51   :  { %v236_v57 = vld [vmem:[#allocation2 + $0x420] sm:$0xff]  ;;  %685 = vmatpush.msra.mxu1 %v172_v56 }
  0x52   :  { %v304_v58 = vld [vmem:[#allocation2 + $0x640] sm:$0xff]  ;;  %705 = vmatpush.msra.mxu2 %v236_v57 }
  0x53   :  { %v104_v59 = vld [vmem:[#allocation2] sm:$0xff]  ;;  %724 = vmatpush.msra.mxu3 %v304_v58 }
  0x54   :  { %v168_v60 = vld [vmem:[#allocation2 + $0x200] sm:$0xff]  ;;  %666 = vmatpush.msra.mxu0 %v104_v59 }
  0x55   :  { %v232_v61 = vld [vmem:[#allocation2 + $0x400] sm:$0xff]  ;;  %686 = vmatpush.msra.mxu1 %v168_v60 }
  0x56   :  { %v300_v62 = vld [vmem:[#allocation2 + $0x620] sm:$0xff]  ;;  %706 = vmatpush.msra.mxu2 %v232_v61 }
  0x57   :  { %v420_v63 = vld [vmem:[#allocation2 + $0x9e0] sm:$0xff]  ;;  %725 = vmatpush.msra.mxu3 %v300_v62 }
  0x58   :  { %v484_v0 = vld [vmem:[#allocation2 + $0xbe0] sm:$0xff]  ;;  %731 = vmatpush.msrb.mxu0 %v420_v63 }
  0x59   :  { %v548_v1 = vld [vmem:[#allocation2 + $0xde0] sm:$0xff]  ;;  %751 = vmatpush.msrb.mxu1 %v484_v0 }
  0x5a   :  { %v296_v2 = vld [vmem:[#allocation2 + $0x600] sm:$0xff]  ;;  %771 = vmatpush.msrb.mxu2 %v548_v1  ;;  %v1956_v1 = vld.sshfl [vmem:[#allocation1] sm:$0xff pattern:$0x73625140] }
  0x5b   :  { %v416_v3 = vld [vmem:[#allocation2 + $0x9c0] sm:$0xff]  ;;  %726 = vmatpush.msra.mxu3 %v296_v2  ;;  %667 = vmatmul.f32.vlgmr.msra.gmra.mxu0 %v1956_v1 }
  0x5c   :  { %v480_v4 = vld [vmem:[#allocation2 + $0xbc0] sm:$0xff]  ;;  %732 = vmatpush.msrb.mxu0 %v416_v3  ;;  %v1960_v3 = vld.sshfl [vmem:[#allocation1 + $0x10] sm:$0xff pattern:$0x73625140] }
  0x5d   :  { %v544_v5 = vld [vmem:[#allocation2 + $0xdc0] sm:$0xff]  ;;  %752 = vmatpush.msrb.mxu1 %v480_v4  ;;  %v165_v4 = vld [vmem:[#allocation2 + $0x1e8] sm:$0xff]  ;;  %707 = vmatmul.f32.vlgmr.msra.gmra.mxu2 %v1960_v3 }
  0x5e   :  { %v612_v6 = vld [vmem:[#allocation2 + $0xfe0] sm:$0xff]  ;;  %772 = vmatpush.msrb.mxu2 %v544_v5  ;;  %v229_v5 = vld [vmem:[#allocation2 + $0x3e8] sm:$0xff] }
  0x5f   :  { %v412_v7 = vld [vmem:[#allocation2 + $0x9a0] sm:$0xff]  ;;  %791 = vmatpush.msrb.mxu3 %v612_v6  ;;  %v293_v6 = vld [vmem:[#allocation2 + $0x5e8] sm:$0xff] }
  0x60   :  { %v476_v8 = vld [vmem:[#allocation2 + $0xba0] sm:$0xff]  ;;  %733 = vmatpush.msrb.mxu0 %v412_v7 }
  0x61   :  { %v540_v9 = vld [vmem:[#allocation2 + $0xda0] sm:$0xff]  ;;  %753 = vmatpush.msrb.mxu1 %v476_v8  ;;  %v161_v8 = vld [vmem:[#allocation2 + $0x1c8] sm:$0xff] }
  0x62   :  { %v608_v10 = vld [vmem:[#allocation2 + $0xfc0] sm:$0xff]  ;;  %773 = vmatpush.msrb.mxu2 %v540_v9  ;;  %v1965_v9 = vld.sshfl [vmem:[#allocation1 + $0x18] sm:$0xff pattern:$0x73625140] }
  0x63   :  { %v408_v11 = vld [vmem:[#allocation2 + $0x980] sm:$0xff]  ;;  %792 = vmatpush.msrb.mxu3 %v608_v10  ;;  %v225_v10 = vld [vmem:[#allocation2 + $0x3c8] sm:$0xff] }
  0x64   :  { %v472_v12 = vld [vmem:[#allocation2 + $0xb80] sm:$0xff]  ;;  %734 = vmatpush.msrb.mxu0 %v408_v11  ;;  %v289_v11 = vld [vmem:[#allocation2 + $0x5c8] sm:$0xff]  ;;  %727 = vmatmul.f32.vlgmr.msra.gmra.mxu3 %v1965_v9 }
  0x65   :  { %v536_v13 = vld [vmem:[#allocation2 + $0xd80] sm:$0xff]  ;;  %754 = vmatpush.msrb.mxu1 %v472_v12  ;;  %v357_v12 = vld [vmem:[#allocation2 + $0x7e8] sm:$0xff] }
  0x66   :  { %v604_v14 = vld [vmem:[#allocation2 + $0xfa0] sm:$0xff]  ;;  %774 = vmatpush.msrb.mxu2 %v536_v13  ;;  %v157_v13 = vld [vmem:[#allocation2 + $0x1a8] sm:$0xff] }
  0x67   :  { %v404_v15 = vld [vmem:[#allocation2 + $0x960] sm:$0xff]  ;;  %793 = vmatpush.msrb.mxu3 %v604_v14  ;;  %v221_v14 = vld [vmem:[#allocation2 + $0x3a8] sm:$0xff] }
  0x68   :  { %v468_v16 = vld [vmem:[#allocation2 + $0xb60] sm:$0xff]  ;;  %735 = vmatpush.msrb.mxu0 %v404_v15  ;;  %v285_v15 = vld [vmem:[#allocation2 + $0x5a8] sm:$0xff] }
  0x69   :  { %v532_v17 = vld [vmem:[#allocation2 + $0xd60] sm:$0xff]  ;;  %755 = vmatpush.msrb.mxu1 %v468_v16  ;;  %v353_v16 = vld [vmem:[#allocation2 + $0x7c8] sm:$0xff] }
  0x6a   :  { %v600_v18 = vld [vmem:[#allocation2 + $0xf80] sm:$0xff]  ;;  %775 = vmatpush.msrb.mxu2 %v532_v17  ;;  %v153_v17 = vld [vmem:[#allocation2 + $0x188] sm:$0xff] }
  0x6b   :  { %v400_v19 = vld [vmem:[#allocation2 + $0x940] sm:$0xff]  ;;  %794 = vmatpush.msrb.mxu3 %v600_v18  ;;  %v217_v18 = vld [vmem:[#allocation2 + $0x388] sm:$0xff] }
  0x6c   :  { %v464_v20 = vld [vmem:[#allocation2 + $0xb40] sm:$0xff]  ;;  %736 = vmatpush.msrb.mxu0 %v400_v19  ;;  %v281_v19 = vld [vmem:[#allocation2 + $0x588] sm:$0xff] }
  0x6d   :  { %v528_v21 = vld [vmem:[#allocation2 + $0xd40] sm:$0xff]  ;;  %756 = vmatpush.msrb.mxu1 %v464_v20  ;;  %v349_v20 = vld [vmem:[#allocation2 + $0x7a8] sm:$0xff] }
  0x6e   :  { %v596_v22 = vld [vmem:[#allocation2 + $0xf60] sm:$0xff]  ;;  %776 = vmatpush.msrb.mxu2 %v528_v21 }
  0x6f   :  { %v396_v23 = vld [vmem:[#allocation2 + $0x920] sm:$0xff]  ;;  %795 = vmatpush.msrb.mxu3 %v596_v22  ;;  %v149_v22 = vld [vmem:[#allocation2 + $0x168] sm:$0xff] }
  0x70   :  { %v460_v24 = vld [vmem:[#allocation2 + $0xb20] sm:$0xff]  ;;  %737 = vmatpush.msrb.mxu0 %v396_v23  ;;  %v213_v23 = vld [vmem:[#allocation2 + $0x368] sm:$0xff] }
  0x71   :  { %v524_v26 = vld [vmem:[#allocation2 + $0xd20] sm:$0xff]  ;;  %757 = vmatpush.msrb.mxu1 %v460_v24  ;;  %v277_v24 = vld [vmem:[#allocation2 + $0x568] sm:$0xff] }
  0x72   :  { %v592_v27 = vld [vmem:[#allocation2 + $0xf40] sm:$0xff]  ;;  %777 = vmatpush.msrb.mxu2 %v524_v26 }
  0x73   :  { %v392_v28 = vld [vmem:[#allocation2 + $0x900] sm:$0xff]  ;;  %796 = vmatpush.msrb.mxu3 %v592_v27 }
  0x74   :  { %v456_v29 = vld [vmem:[#allocation2 + $0xb00] sm:$0xff]  ;;  %738 = vmatpush.msrb.mxu0 %v392_v28  ;;  %v145_v28 = vld [vmem:[#allocation2 + $0x148] sm:$0xff] }
  0x75   :  { %v520_v30 = vld [vmem:[#allocation2 + $0xd00] sm:$0xff]  ;;  %758 = vmatpush.msrb.mxu1 %v456_v29  ;;  %v209_v29 = vld [vmem:[#allocation2 + $0x348] sm:$0xff] }
  0x76   :  { %v588_v31 = vld [vmem:[#allocation2 + $0xf20] sm:$0xff]  ;;  %778 = vmatpush.msrb.mxu2 %v520_v30  ;;  %v273_v30 = vld [vmem:[#allocation2 + $0x548] sm:$0xff] }
  0x77   :  { %v388_v32 = vld [vmem:[#allocation2 + $0x8e0] sm:$0xff]  ;;  %797 = vmatpush.msrb.mxu3 %v588_v31  ;;  %v341_v31 = vld [vmem:[#allocation2 + $0x768] sm:$0xff] }
  0x78   :  { %v452_v33 = vld [vmem:[#allocation2 + $0xae0] sm:$0xff]  ;;  %739 = vmatpush.msrb.mxu0 %v388_v32 }
  0x79   :  { %v516_v34 = vld [vmem:[#allocation2 + $0xce0] sm:$0xff]  ;;  %759 = vmatpush.msrb.mxu1 %v452_v33  ;;  %v141_v33 = vld [vmem:[#allocation2 + $0x128] sm:$0xff] }
  0x7a   :  { %v584_v35 = vld [vmem:[#allocation2 + $0xf00] sm:$0xff]  ;;  %779 = vmatpush.msrb.mxu2 %v516_v34  ;;  %v205_v34 = vld [vmem:[#allocation2 + $0x328] sm:$0xff] }
  0x7b   :  { %v384_v36 = vld [vmem:[#allocation2 + $0x8c0] sm:$0xff]  ;;  %798 = vmatpush.msrb.mxu3 %v584_v35  ;;  %v269_v35 = vld [vmem:[#allocation2 + $0x528] sm:$0xff] }
  0x7c   :  { %v448_v37 = vld [vmem:[#allocation2 + $0xac0] sm:$0xff]  ;;  %740 = vmatpush.msrb.mxu0 %v384_v36  ;;  %v337_v36 = vld [vmem:[#allocation2 + $0x748] sm:$0xff] }
  0x7d   :  { %v103_v38 = vld [vmem:[%s2055_s0 + $0x8] sm:$0xff]  ;;  %760 = vmatpush.msrb.mxu1 %v448_v37  ;;  %v137_v37 = vld [vmem:[#allocation2 + $0x108] sm:$0xff]  ;;  %s1899_s0 = smov [#allocation11]  }
  0x7e   :  { %v512_v39 = vld [vmem:[#allocation2 + $0xcc0] sm:$0xff]  ;;  %634 = vst [vmem:[#allocation1 + $0x20] ss:$4 sm:$0xff] %v103_v38  ;;  %v201_v38 = vld [vmem:[#allocation2 + $0x308] sm:$0xff]  ;;  %s1701_s27 = sshll.u32 %s1899_s0, 4  ;;  %s1702_s27 = int_to_ptr.vmem [resolvable:$true] %s1701_s27 }
  0x7f   :  { %v580_v40 = vld [vmem:[#allocation2 + $0xee0] sm:$0xff]  ;;  %780 = vmatpush.msrb.mxu2 %v512_v39  ;;  %v265_v39 = vld [vmem:[#allocation2 + $0x508] sm:$0xff] }
  0x80   :  { %v380_v41 = vld [vmem:[#allocation2 + $0x8a0] sm:$0xff]  ;;  %799 = vmatpush.msrb.mxu3 %v580_v40  ;;  %v333_v40 = vld [vmem:[#allocation2 + $0x728] sm:$0xff] }
  0x81   :  { %v444_v42 = vld [vmem:[#allocation2 + $0xaa0] sm:$0xff]  ;;  %741 = vmatpush.msrb.mxu0 %v380_v41  ;;  %v133_v41 = vld [vmem:[#allocation2 + $0xe8] sm:$0xff] }
  0x82   :  { %v508_v43 = vld [vmem:[#allocation2 + $0xca0] sm:$0xff]  ;;  %761 = vmatpush.msrb.mxu1 %v444_v42  ;;  %v197_v42 = vld [vmem:[#allocation2 + $0x2e8] sm:$0xff] }
  0x83   :  { %v576_v44 = vld [vmem:[#allocation2 + $0xec0] sm:$0xff]  ;;  %781 = vmatpush.msrb.mxu2 %v508_v43  ;;  %v261_v43 = vld [vmem:[#allocation2 + $0x4e8] sm:$0xff] }
  0x84   :  { %v376_v45 = vld [vmem:[#allocation2 + $0x880] sm:$0xff]  ;;  %800 = vmatpush.msrb.mxu3 %v576_v44  ;;  %v329_v44 = vld [vmem:[#allocation2 + $0x708] sm:$0xff] }
  0x85   :  { %v440_v46 = vld [vmem:[#allocation2 + $0xa80] sm:$0xff]  ;;  %742 = vmatpush.msrb.mxu0 %v376_v45  ;;  %v1968_v21 = vld.sshfl [vmem:[#allocation1 + $0x30] sm:$0xff pattern:$0x73625140] }
  0x86   :  { %v504_v47 = vld [vmem:[#allocation2 + $0xc80] sm:$0xff]  ;;  %762 = vmatpush.msrb.mxu1 %v440_v46  ;;  %v1970_v26 = vld.sshfl [vmem:[#allocation1 + $0x20] sm:$0xff pattern:$0x73625140]  ;;  %v129_v45 = vld [vmem:[#allocation2 + $0xc8] sm:$0xff] }
  0x87   :  { %v572_v48 = vld [vmem:[#allocation2 + $0xea0] sm:$0xff]  ;;  %782 = vmatpush.msrb.mxu2 %v504_v47  ;;  %v1973_v27 = vld.sshfl [vmem:[#allocation1 + $0x38] sm:$0xff pattern:$0x73625140]  ;;  %v193_v46 = vld [vmem:[#allocation2 + $0x2c8] sm:$0xff] }
  0x88   :  { %v372_v49 = vld [vmem:[#allocation2 + $0x860] sm:$0xff]  ;;  %801 = vmatpush.msrb.mxu3 %v572_v48  ;;  %v257_v47 = vld [vmem:[#allocation2 + $0x4c8] sm:$0xff] }
  0x89   :  { %v436_v50 = vld [vmem:[#allocation2 + $0xa60] sm:$0xff]  ;;  %743 = vmatpush.msrb.mxu0 %v372_v49  ;;  %v325_v48 = vld [vmem:[#allocation2 + $0x6e8] sm:$0xff] }
  0x8a   :  { %v500_v51 = vld [vmem:[#allocation2 + $0xc60] sm:$0xff]  ;;  %763 = vmatpush.msrb.mxu1 %v436_v50  ;;  %v125_v49 = vld [vmem:[#allocation2 + $0xa8] sm:$0xff] }
  0x8b   :  { %v568_v52 = vld [vmem:[#allocation2 + $0xe80] sm:$0xff]  ;;  %783 = vmatpush.msrb.mxu2 %v500_v51  ;;  %v189_v50 = vld [vmem:[#allocation2 + $0x2a8] sm:$0xff] }
  0x8c   :  { %v368_v53 = vld [vmem:[#allocation2 + $0x840] sm:$0xff]  ;;  %802 = vmatpush.msrb.mxu3 %v568_v52  ;;  %v253_v51 = vld [vmem:[#allocation2 + $0x4a8] sm:$0xff] }
  0x8d   :  { %v432_v54 = vld [vmem:[#allocation2 + $0xa40] sm:$0xff]  ;;  %744 = vmatpush.msrb.mxu0 %v368_v53  ;;  %v321_v52 = vld [vmem:[#allocation2 + $0x6c8] sm:$0xff] }
  0x8e   :  { %v496_v55 = vld [vmem:[#allocation2 + $0xc40] sm:$0xff]  ;;  %764 = vmatpush.msrb.mxu1 %v432_v54  ;;  %v121_v53 = vld [vmem:[#allocation2 + $0x88] sm:$0xff] }
  0x8f   :  { %v564_v56 = vld [vmem:[#allocation2 + $0xe60] sm:$0xff]  ;;  %784 = vmatpush.msrb.mxu2 %v496_v55  ;;  %v185_v54 = vld [vmem:[#allocation2 + $0x288] sm:$0xff] }
  0x90   :  { %v364_v57 = vld [vmem:[#allocation2 + $0x820] sm:$0xff]  ;;  %803 = vmatpush.msrb.mxu3 %v564_v56  ;;  %v249_v55 = vld [vmem:[#allocation2 + $0x488] sm:$0xff] }
  0x91   :  { %v428_v58 = vld [vmem:[#allocation2 + $0xa20] sm:$0xff]  ;;  %745 = vmatpush.msrb.mxu0 %v364_v57  ;;  %v317_v56 = vld [vmem:[#allocation2 + $0x6a8] sm:$0xff] }
  0x92   :  { %v492_v59 = vld [vmem:[#allocation2 + $0xc20] sm:$0xff]  ;;  %765 = vmatpush.msrb.mxu1 %v428_v58  ;;  %v117_v57 = vld [vmem:[#allocation2 + $0x68] sm:$0xff] }
  0x93   :  { %v560_v60 = vld [vmem:[#allocation2 + $0xe40] sm:$0xff]  ;;  %785 = vmatpush.msrb.mxu2 %v492_v59  ;;  %v181_v58 = vld [vmem:[#allocation2 + $0x268] sm:$0xff] }
  0x94   :  { %v360_v61 = vld [vmem:[#allocation2 + $0x800] sm:$0xff]  ;;  %804 = vmatpush.msrb.mxu3 %v560_v60  ;;  %v245_v59 = vld [vmem:[#allocation2 + $0x468] sm:$0xff] }
  0x95   :  { %v424_v62 = vld [vmem:[#allocation2 + $0xa00] sm:$0xff]  ;;  %746 = vmatpush.msrb.mxu0 %v360_v61  ;;  %v313_v60 = vld [vmem:[#allocation2 + $0x688] sm:$0xff] }
  0x96   :  { %v488_v63 = vld [vmem:[#allocation2 + $0xc00] sm:$0xff]  ;;  %766 = vmatpush.msrb.mxu1 %v424_v62  ;;  %747 = vmatmul.f32.vlgmr.msrb.gmra.mxu0 %v1970_v26  ;;  %v113_v61 = vld [vmem:[#allocation2 + $0x48] sm:$0xff] }
  0x97   :  { %v556_v0 = vld [vmem:[#allocation2 + $0xe20] sm:$0xff]  ;;  %786 = vmatpush.msrb.mxu2 %v488_v63  ;;  %811 = vmatpush.msra.mxu0 %v165_v4  ;;  %v177_v62 = vld [vmem:[#allocation2 + $0x248] sm:$0xff] }
  0x98   :  { %v1958_v2 = vld.sshfl [vmem:[#allocation1 + $0x8] sm:$0xff pattern:$0x73625140]  ;;  %805 = vmatpush.msrb.mxu3 %v556_v0  ;;  %787 = vmatmul.f32.vlgmr.msrb.gmra.mxu2 %v1968_v21  ;;  %v241_v63 = vld [vmem:[#allocation2 + $0x448] sm:$0xff] }
  0x99   :  { %687 = vmatmul.f32.vlgmr.msra.gmra.mxu1 %v1958_v2  ;;  %v552_v7 = vld [vmem:[#allocation2 + $0xe00] sm:$0xff]  ;;  %851 = vmatpush.msra.mxu2 %v293_v6  ;;  %v309_v0 = vld [vmem:[#allocation2 + $0x668] sm:$0xff] }
  0x9a   :  { %831 = vmatpush.msra.mxu1 %v229_v5  ;;  %806 = vmatpush.msrb.mxu3 %v552_v7  ;;  %v1976_v32 = vld.sshfl [vmem:[#allocation1 + $0x28] sm:$0xff pattern:$0x73625140]  ;;  %v109_v4 = vld [vmem:[#allocation2 + $0x28] sm:$0xff] }
  0x9b   :  { %812 = vmatpush.msra.mxu0 %v161_v8  ;;  %852 = vmatpush.msra.mxu2 %v289_v11  ;;  %v173_v5 = vld [vmem:[#allocation2 + $0x228] sm:$0xff] }
  0x9c   :  { %832 = vmatpush.msra.mxu1 %v225_v10  ;;  %871 = vmatpush.msra.mxu3 %v357_v12  ;;  %v237_v6 = vld [vmem:[#allocation2 + $0x428] sm:$0xff] }
  0x9d   :  { %813 = vmatpush.msra.mxu0 %v157_v13  ;;  %853 = vmatpush.msra.mxu2 %v285_v15  ;;  %v305_v7 = vld [vmem:[#allocation2 + $0x648] sm:$0xff] }
  0x9e   :  { %833 = vmatpush.msra.mxu1 %v221_v14  ;;  %872 = vmatpush.msra.mxu3 %v353_v16  ;;  %v105_v8 = vld [vmem:[#allocation2 + $0x8] sm:$0xff] }
  0x9f   :  { %814 = vmatpush.msra.mxu0 %v153_v17  ;;  %854 = vmatpush.msra.mxu2 %v281_v19  ;;  %v169_v10 = vld [vmem:[#allocation2 + $0x208] sm:$0xff] }
  0xa0   :  { %834 = vmatpush.msra.mxu1 %v217_v18  ;;  %873 = vmatpush.msra.mxu3 %v349_v20  ;;  %v233_v11 = vld [vmem:[#allocation2 + $0x408] sm:$0xff] }
  0xa1   :  { %815 = vmatpush.msra.mxu0 %v149_v22  ;;  %855 = vmatpush.msra.mxu2 %v277_v24  ;;  %v301_v12 = vld [vmem:[#allocation2 + $0x628] sm:$0xff] }
  0xa2   :  { %835 = vmatpush.msra.mxu1 %v213_v23  ;;  %874 = vmatpush.msra.mxu3 %v345_v25  ;;  %v421_v13 = vld [vmem:[#allocation2 + $0x9e8] sm:$0xff] }
  0xa3   :  { %807 = vmatmul.f32.vlgmr.msrb.gmra.mxu3 %v1973_v27  ;;  %816 = vmatpush.msra.mxu0 %v145_v28  ;;  %v485_v14 = vld [vmem:[#allocation2 + $0xbe8] sm:$0xff] }
  0xa4   :  { %836 = vmatpush.msra.mxu1 %v209_v29  ;;  %856 = vmatpush.msra.mxu2 %v273_v30  ;;  %v549_v15 = vld [vmem:[#allocation2 + $0xde8] sm:$0xff] }
  0xa5   :  { %875 = vmatpush.msra.mxu3 %v341_v31  ;;  %767 = vmatmul.f32.vlgmr.msrb.gmra.mxu1 %v1976_v32  ;;  %v297_v16 = vld [vmem:[#allocation2 + $0x608] sm:$0xff] }
  0xa6   :  { %817 = vmatpush.msra.mxu0 %v141_v33  ;;  %837 = vmatpush.msra.mxu1 %v205_v34  ;;  %v417_v17 = vld [vmem:[#allocation2 + $0x9c8] sm:$0xff] }
  0xa7   :  { %857 = vmatpush.msra.mxu2 %v269_v35  ;;  %876 = vmatpush.msra.mxu3 %v337_v36  ;;  %v481_v18 = vld [vmem:[#allocation2 + $0xbc8] sm:$0xff] }
  0xa8   :  { %818 = vmatpush.msra.mxu0 %v137_v37  ;;  %838 = vmatpush.msra.mxu1 %v201_v38  ;;  %v545_v19 = vld [vmem:[#allocation2 + $0xdc8] sm:$0xff] }
  0xa9   :  { %858 = vmatpush.msra.mxu2 %v265_v39  ;;  %877 = vmatpush.msra.mxu3 %v333_v40  ;;  %v613_v20 = vld [vmem:[#allocation2 + $0xfe8] sm:$0xff] }
  0xaa   :  { %819 = vmatpush.msra.mxu0 %v133_v41  ;;  %839 = vmatpush.msra.mxu1 %v197_v42  ;;  %v413_v22 = vld [vmem:[#allocation2 + $0x9a8] sm:$0xff] }
  0xab   :  { %859 = vmatpush.msra.mxu2 %v261_v43  ;;  %878 = vmatpush.msra.mxu3 %v329_v44  ;;  %v477_v23 = vld [vmem:[#allocation2 + $0xba8] sm:$0xff] }
  0xac   :  { %820 = vmatpush.msra.mxu0 %v129_v45  ;;  %840 = vmatpush.msra.mxu1 %v193_v46  ;;  %v541_v24 = vld [vmem:[#allocation2 + $0xda8] sm:$0xff] }
  0xad   :  { %860 = vmatpush.msra.mxu2 %v257_v47  ;;  %879 = vmatpush.msra.mxu3 %v325_v48  ;;  %v609_v25 = vld [vmem:[#allocation2 + $0xfc8] sm:$0xff] }
  0xae   :  { %821 = vmatpush.msra.mxu0 %v125_v49  ;;  %841 = vmatpush.msra.mxu1 %v189_v50  ;;  %v409_v28 = vld [vmem:[#allocation2 + $0x988] sm:$0xff] }
  0xaf   :  { %861 = vmatpush.msra.mxu2 %v253_v51  ;;  %880 = vmatpush.msra.mxu3 %v321_v52  ;;  %v473_v29 = vld [vmem:[#allocation2 + $0xb88] sm:$0xff] }
  0xb0   :  { %822 = vmatpush.msra.mxu0 %v121_v53  ;;  %842 = vmatpush.msra.mxu1 %v185_v54  ;;  %v537_v30 = vld [vmem:[#allocation2 + $0xd88] sm:$0xff] }
  0xb1   :  { %862 = vmatpush.msra.mxu2 %v249_v55  ;;  %881 = vmatpush.msra.mxu3 %v317_v56  ;;  %v605_v31 = vld [vmem:[#allocation2 + $0xfa8] sm:$0xff] }
  0xb2   :  { %823 = vmatpush.msra.mxu0 %v117_v57  ;;  %843 = vmatpush.msra.mxu1 %v181_v58  ;;  %v405_v33 = vld [vmem:[#allocation2 + $0x968] sm:$0xff] }
  0xb3   :  { %863 = vmatpush.msra.mxu2 %v245_v59  ;;  %882 = vmatpush.msra.mxu3 %v313_v60  ;;  %v469_v34 = vld [vmem:[#allocation2 + $0xb68] sm:$0xff] }
  0xb4   :  { %824 = vmatpush.msra.mxu0 %v113_v61  ;;  %844 = vmatpush.msra.mxu1 %v177_v62  ;;  %v533_v35 = vld [vmem:[#allocation2 + $0xd68] sm:$0xff] }
  0xb5   :  { %864 = vmatpush.msra.mxu2 %v241_v63  ;;  %883 = vmatpush.msra.mxu3 %v309_v0  ;;  %v601_v36 = vld [vmem:[#allocation2 + $0xf88] sm:$0xff] }
  0xb6   :  { %825 = vmatpush.msra.mxu0 %v109_v4  ;;  %845 = vmatpush.msra.mxu1 %v173_v5  ;;  %v401_v37 = vld [vmem:[#allocation2 + $0x948] sm:$0xff] }
  0xb7   :  { %865 = vmatpush.msra.mxu2 %v237_v6  ;;  %884 = vmatpush.msra.mxu3 %v305_v7  ;;  %v465_v38 = vld [vmem:[#allocation2 + $0xb48] sm:$0xff] }
  0xb8   :  { %826 = vmatpush.msra.mxu0 %v105_v8  ;;  %846 = vmatpush.msra.mxu1 %v169_v10  ;;  %v529_v39 = vld [vmem:[#allocation2 + $0xd48] sm:$0xff] }
  0xb9   :  { %866 = vmatpush.msra.mxu2 %v233_v11  ;;  %885 = vmatpush.msra.mxu3 %v301_v12  ;;  %v597_v40 = vld [vmem:[#allocation2 + $0xf68] sm:$0xff] }
  0xba   :  { %891 = vmatpush.msrb.mxu0 %v421_v13  ;;  %911 = vmatpush.msrb.mxu1 %v485_v14  ;;  %v397_v41 = vld [vmem:[#allocation2 + $0x928] sm:$0xff] }
  0xbb   :  { %931 = vmatpush.msrb.mxu2 %v549_v15  ;;  %886 = vmatpush.msra.mxu3 %v297_v16  ;;  %v461_v42 = vld [vmem:[#allocation2 + $0xb28] sm:$0xff] }
  0xbc   :  { %892 = vmatpush.msrb.mxu0 %v417_v17  ;;  %912 = vmatpush.msrb.mxu1 %v481_v18  ;;  %v525_v43 = vld [vmem:[#allocation2 + $0xd28] sm:$0xff] }
  0xbd   :  { %932 = vmatpush.msrb.mxu2 %v545_v19  ;;  %951 = vmatpush.msrb.mxu3 %v613_v20  ;;  %v593_v44 = vld [vmem:[#allocation2 + $0xf48] sm:$0xff] }
  0xbe   :  { %893 = vmatpush.msrb.mxu0 %v413_v22  ;;  %913 = vmatpush.msrb.mxu1 %v477_v23  ;;  %v393_v45 = vld [vmem:[#allocation2 + $0x908] sm:$0xff]  ;;  %v166_v22 = vld [vmem:[#allocation2 + $0x1f0] sm:$0xff] }
  0xbf   :  { %933 = vmatpush.msrb.mxu2 %v541_v24  ;;  %952 = vmatpush.msrb.mxu3 %v609_v25  ;;  %v457_v46 = vld [vmem:[#allocation2 + $0xb08] sm:$0xff]  ;;  %v230_v23 = vld [vmem:[#allocation2 + $0x3f0] sm:$0xff] }
  0xc0   :  { %894 = vmatpush.msrb.mxu0 %v409_v28  ;;  %914 = vmatpush.msrb.mxu1 %v473_v29  ;;  %v521_v47 = vld [vmem:[#allocation2 + $0xd08] sm:$0xff]  ;;  %v294_v24 = vld [vmem:[#allocation2 + $0x5f0] sm:$0xff] }
  0xc1   :  { %934 = vmatpush.msrb.mxu2 %v537_v30  ;;  %953 = vmatpush.msrb.mxu3 %v605_v31  ;;  %v589_v48 = vld [vmem:[#allocation2 + $0xf28] sm:$0xff]  ;;  %v162_v28 = vld [vmem:[#allocation2 + $0x1d0] sm:$0xff] }
  0xc2   :  { %895 = vmatpush.msrb.mxu0 %v405_v33  ;;  %915 = vmatpush.msrb.mxu1 %v469_v34  ;;  %v389_v49 = vld [vmem:[#allocation2 + $0x8e8] sm:$0xff]  ;;  %v226_v29 = vld [vmem:[#allocation2 + $0x3d0] sm:$0xff] }
  0xc3   :  { %935 = vmatpush.msrb.mxu2 %v533_v35  ;;  %954 = vmatpush.msrb.mxu3 %v601_v36  ;;  %v453_v50 = vld [vmem:[#allocation2 + $0xae8] sm:$0xff]  ;;  %v290_v30 = vld [vmem:[#allocation2 + $0x5d0] sm:$0xff] }
  0xc4   :  { %896 = vmatpush.msrb.mxu0 %v401_v37  ;;  %916 = vmatpush.msrb.mxu1 %v465_v38  ;;  %v517_v51 = vld [vmem:[#allocation2 + $0xce8] sm:$0xff]  ;;  %v358_v31 = vld [vmem:[#allocation2 + $0x7f0] sm:$0xff] }
  0xc5   :  { %936 = vmatpush.msrb.mxu2 %v529_v39  ;;  %955 = vmatpush.msrb.mxu3 %v597_v40  ;;  %v585_v52 = vld [vmem:[#allocation2 + $0xf08] sm:$0xff]  ;;  %v158_v33 = vld [vmem:[#allocation2 + $0x1b0] sm:$0xff] }
  0xc6   :  { %897 = vmatpush.msrb.mxu0 %v397_v41  ;;  %917 = vmatpush.msrb.mxu1 %v461_v42  ;;  %v385_v53 = vld [vmem:[#allocation2 + $0x8c8] sm:$0xff]  ;;  %v222_v34 = vld [vmem:[#allocation2 + $0x3b0] sm:$0xff] }
  0xc7   :  { %937 = vmatpush.msrb.mxu2 %v525_v43  ;;  %956 = vmatpush.msrb.mxu3 %v593_v44  ;;  %v449_v54 = vld [vmem:[#allocation2 + $0xac8] sm:$0xff]  ;;  %v354_v35 = vld [vmem:[#allocation2 + $0x7d0] sm:$0xff] }
  0xc8   :  { %898 = vmatpush.msrb.mxu0 %v393_v45  ;;  %918 = vmatpush.msrb.mxu1 %v457_v46  ;;  %v513_v55 = vld [vmem:[#allocation2 + $0xcc8] sm:$0xff]  ;;  %v218_v36 = vld [vmem:[#allocation2 + $0x390] sm:$0xff] }
  0xc9   :  { %938 = vmatpush.msrb.mxu2 %v521_v47  ;;  %957 = vmatpush.msrb.mxu3 %v589_v48  ;;  %v581_v56 = vld [vmem:[#allocation2 + $0xee8] sm:$0xff]  ;;  %v282_v37 = vld [vmem:[#allocation2 + $0x590] sm:$0xff] }
  0xca   :  { %899 = vmatpush.msrb.mxu0 %v389_v49  ;;  %919 = vmatpush.msrb.mxu1 %v453_v50  ;;  %v381_v57 = vld [vmem:[#allocation2 + $0x8a8] sm:$0xff]  ;;  %v350_v38 = vld [vmem:[#allocation2 + $0x7b0] sm:$0xff] }
  0xcb   :  { %939 = vmatpush.msrb.mxu2 %v517_v51  ;;  %958 = vmatpush.msrb.mxu3 %v585_v52  ;;  %v445_v58 = vld [vmem:[#allocation2 + $0xaa8] sm:$0xff]  ;;  %v150_v39 = vld [vmem:[#allocation2 + $0x170] sm:$0xff] }
  0xcc   :  { %900 = vmatpush.msrb.mxu0 %v385_v53  ;;  %920 = vmatpush.msrb.mxu1 %v449_v54  ;;  %v509_v59 = vld [vmem:[#allocation2 + $0xca8] sm:$0xff]  ;;  %v214_v40 = vld [vmem:[#allocation2 + $0x370] sm:$0xff] }
  0xcd   :  { %v577_v60 = vld [vmem:[#allocation2 + $0xec8] sm:$0xff]  ;;  %940 = vmatpush.msrb.mxu2 %v513_v55  ;;  %959 = vmatpush.msrb.mxu3 %v581_v56  ;;  %v278_v41 = vld [vmem:[#allocation2 + $0x570] sm:$0xff] }
  0xce   :  { %v377_v61 = vld [vmem:[#allocation2 + $0x888] sm:$0xff]  ;;  %901 = vmatpush.msrb.mxu0 %v381_v57  ;;  %921 = vmatpush.msrb.mxu1 %v445_v58  ;;  %v346_v42 = vld [vmem:[#allocation2 + $0x790] sm:$0xff] }
  0xcf   :  { %v441_v62 = vld [vmem:[#allocation2 + $0xa88] sm:$0xff]  ;;  %941 = vmatpush.msrb.mxu2 %v509_v59  ;;  %960 = vmatpush.msrb.mxu3 %v577_v60  ;;  %v146_v43 = vld [vmem:[#allocation2 + $0x150] sm:$0xff] }
  0xd0   :  { %v505_v63 = vld [vmem:[#allocation2 + $0xc88] sm:$0xff]  ;;  %902 = vmatpush.msrb.mxu0 %v377_v61  ;;  %922 = vmatpush.msrb.mxu1 %v441_v62  ;;  %v210_v44 = vld [vmem:[#allocation2 + $0x350] sm:$0xff] }
  0xd1   :  { %v573_v0 = vld [vmem:[#allocation2 + $0xea8] sm:$0xff]  ;;  %942 = vmatpush.msrb.mxu2 %v505_v63  ;;  %827 = vmatmul.f32.vlgmr.msra.gmra.mxu0 %v1956_v1  ;;  %v286_v1 = vld [vmem:[#allocation2 + $0x5b0] sm:$0xff] }
  0xd2   :  { %v373_v4 = vld [vmem:[#allocation2 + $0x868] sm:$0xff]  ;;  %961 = vmatpush.msrb.mxu3 %v573_v0  ;;  %847 = vmatmul.f32.vlgmr.msra.gmra.mxu1 %v1958_v2  ;;  %v154_v2 = vld [vmem:[#allocation2 + $0x190] sm:$0xff] }
  0xd3   :  { %v437_v5 = vld [vmem:[#allocation2 + $0xa68] sm:$0xff]  ;;  %903 = vmatpush.msrb.mxu0 %v373_v4  ;;  %867 = vmatmul.f32.vlgmr.msra.gmra.mxu2 %v1960_v3  ;;  %v274_v45 = vld [vmem:[#allocation2 + $0x550] sm:$0xff] }
  0xd4   :  { %v501_v6 = vld [vmem:[#allocation2 + $0xc68] sm:$0xff]  ;;  %923 = vmatpush.msrb.mxu1 %v437_v5  ;;  %887 = vmatmul.f32.vlgmr.msra.gmra.mxu3 %v1965_v9  ;;  %v342_v46 = vld [vmem:[#allocation2 + $0x770] sm:$0xff] }
  0xd5   :  { %v569_v7 = vld [vmem:[#allocation2 + $0xe88] sm:$0xff]  ;;  %943 = vmatpush.msrb.mxu2 %v501_v6  ;;  %v142_v47 = vld [vmem:[#allocation2 + $0x130] sm:$0xff] }
  0xd6   :  { %v369_v8 = vld [vmem:[#allocation2 + $0x848] sm:$0xff]  ;;  %962 = vmatpush.msrb.mxu3 %v569_v7  ;;  %v206_v48 = vld [vmem:[#allocation2 + $0x330] sm:$0xff] }
  0xd7   :  { %v433_v10 = vld [vmem:[#allocation2 + $0xa48] sm:$0xff]  ;;  %904 = vmatpush.msrb.mxu0 %v369_v8  ;;  %v270_v49 = vld [vmem:[#allocation2 + $0x530] sm:$0xff] }
  0xd8   :  { %v497_v11 = vld [vmem:[#allocation2 + $0xc48] sm:$0xff]  ;;  %924 = vmatpush.msrb.mxu1 %v433_v10  ;;  %v338_v50 = vld [vmem:[#allocation2 + $0x750] sm:$0xff] }
  0xd9   :  { %v565_v12 = vld [vmem:[#allocation2 + $0xe68] sm:$0xff]  ;;  %944 = vmatpush.msrb.mxu2 %v497_v11  ;;  %v138_v51 = vld [vmem:[#allocation2 + $0x110] sm:$0xff] }
  0xda   :  { %v365_v13 = vld [vmem:[#allocation2 + $0x828] sm:$0xff]  ;;  %963 = vmatpush.msrb.mxu3 %v565_v12  ;;  %v202_v52 = vld [vmem:[#allocation2 + $0x310] sm:$0xff] }
  0xdb   :  { %v429_v14 = vld [vmem:[#allocation2 + $0xa28] sm:$0xff]  ;;  %905 = vmatpush.msrb.mxu0 %v365_v13  ;;  %v266_v53 = vld [vmem:[#allocation2 + $0x510] sm:$0xff] }
  0xdc   :  { %v493_v15 = vld [vmem:[#allocation2 + $0xc28] sm:$0xff]  ;;  %925 = vmatpush.msrb.mxu1 %v429_v14  ;;  %v334_v54 = vld [vmem:[#allocation2 + $0x730] sm:$0xff] }
  0xdd   :  { %v561_v16 = vld [vmem:[#allocation2 + $0xe48] sm:$0xff]  ;;  %945 = vmatpush.msrb.mxu2 %v493_v15  ;;  %v134_v55 = vld [vmem:[#allocation2 + $0xf0] sm:$0xff] }
  0xde   :  { %v361_v17 = vld [vmem:[#allocation2 + $0x808] sm:$0xff]  ;;  %964 = vmatpush.msrb.mxu3 %v561_v16  ;;  %v198_v56 = vld [vmem:[#allocation2 + $0x2f0] sm:$0xff] }
  0xdf   :  { %v425_v18 = vld [vmem:[#allocation2 + $0xa08] sm:$0xff]  ;;  %906 = vmatpush.msrb.mxu0 %v361_v17  ;;  %v262_v57 = vld [vmem:[#allocation2 + $0x4f0] sm:$0xff] }
  0xe0   :  { %v489_v19 = vld [vmem:[#allocation2 + $0xc08] sm:$0xff]  ;;  %926 = vmatpush.msrb.mxu1 %v425_v18  ;;  %907 = vmatmul.f32.vlgmr.msrb.gmra.mxu0 %v1970_v26  ;;  %v330_v58 = vld [vmem:[#allocation2 + $0x710] sm:$0xff] }
  0xe1   :  { %v557_v20 = vld [vmem:[#allocation2 + $0xe28] sm:$0xff]  ;;  %946 = vmatpush.msrb.mxu2 %v489_v19  ;;  %971 = vmatpush.msra.mxu0 %v166_v22  ;;  %v130_v59 = vld [vmem:[#allocation2 + $0xd0] sm:$0xff] }
  0xe2   :  { %965 = vmatpush.msrb.mxu3 %v557_v20  ;;  %v553_v25 = vld [vmem:[#allocation2 + $0xe08] sm:$0xff]  ;;  %991 = vmatpush.msra.mxu1 %v230_v23  ;;  %v194_v60 = vld [vmem:[#allocation2 + $0x2d0] sm:$0xff] }
  0xe3   :  { %1011 = vmatpush.msra.mxu2 %v294_v24  ;;  %972 = vmatpush.msra.mxu0 %v162_v28  ;;  %v258_v61 = vld [vmem:[#allocation2 + $0x4d0] sm:$0xff] }
  0xe4   :  { %966 = vmatpush.msrb.mxu3 %v553_v25  ;;  %992 = vmatpush.msra.mxu1 %v226_v29  ;;  %v326_v62 = vld [vmem:[#allocation2 + $0x6f0] sm:$0xff] }
  0xe5   :  { %1012 = vmatpush.msra.mxu2 %v290_v30  ;;  %973 = vmatpush.msra.mxu0 %v158_v33  ;;  %v126_v63 = vld [vmem:[#allocation2 + $0xb0] sm:$0xff] }
  0xe6   :  { %1031 = vmatpush.msra.mxu3 %v358_v31  ;;  %993 = vmatpush.msra.mxu1 %v222_v34  ;;  %v190_v0 = vld [vmem:[#allocation2 + $0x2b0] sm:$0xff] }
  0xe7   :  { %1013 = vmatpush.msra.mxu2 %v286_v1  ;;  %974 = vmatpush.msra.mxu0 %v154_v2  ;;  %v254_v4 = vld [vmem:[#allocation2 + $0x4b0] sm:$0xff] }
  0xe8   :  { %1032 = vmatpush.msra.mxu3 %v354_v35  ;;  %994 = vmatpush.msra.mxu1 %v218_v36  ;;  %v322_v5 = vld [vmem:[#allocation2 + $0x6d0] sm:$0xff] }
  0xe9   :  { %1014 = vmatpush.msra.mxu2 %v282_v37  ;;  %975 = vmatpush.msra.mxu0 %v150_v39  ;;  %v122_v6 = vld [vmem:[#allocation2 + $0x90] sm:$0xff] }
  0xea   :  { %1033 = vmatpush.msra.mxu3 %v350_v38  ;;  %947 = vmatmul.f32.vlgmr.msrb.gmra.mxu2 %v1968_v21  ;;  %v186_v7 = vld [vmem:[#allocation2 + $0x290] sm:$0xff] }
  0xeb   :  { %995 = vmatpush.msra.mxu1 %v214_v40  ;;  %1015 = vmatpush.msra.mxu2 %v278_v41  ;;  %v250_v8 = vld [vmem:[#allocation2 + $0x490] sm:$0xff] }
  0xec   :  { %1034 = vmatpush.msra.mxu3 %v346_v42  ;;  %976 = vmatpush.msra.mxu0 %v146_v43  ;;  %v318_v10 = vld [vmem:[#allocation2 + $0x6b0] sm:$0xff] }
  0xed   :  { %967 = vmatmul.f32.vlgmr.msrb.gmra.mxu3 %v1973_v27  ;;  %996 = vmatpush.msra.mxu1 %v210_v44  ;;  %v118_v11 = vld [vmem:[#allocation2 + $0x70] sm:$0xff] }
  0xee   :  { %1016 = vmatpush.msra.mxu2 %v274_v45  ;;  %1035 = vmatpush.msra.mxu3 %v342_v46  ;;  %v182_v12 = vld [vmem:[#allocation2 + $0x270] sm:$0xff] }
  0xef   :  { %927 = vmatmul.f32.vlgmr.msrb.gmra.mxu1 %v1976_v32  ;;  %977 = vmatpush.msra.mxu0 %v142_v47  ;;  %v246_v13 = vld [vmem:[#allocation2 + $0x470] sm:$0xff] }
  0xf0   :  { %997 = vmatpush.msra.mxu1 %v206_v48  ;;  %1017 = vmatpush.msra.mxu2 %v270_v49  ;;  %v314_v14 = vld [vmem:[#allocation2 + $0x690] sm:$0xff] }
  0xf1   :  { %1036 = vmatpush.msra.mxu3 %v338_v50  ;;  %978 = vmatpush.msra.mxu0 %v138_v51  ;;  %v114_v15 = vld [vmem:[#allocation2 + $0x50] sm:$0xff] }
  0xf2   :  { %998 = vmatpush.msra.mxu1 %v202_v52  ;;  %1018 = vmatpush.msra.mxu2 %v266_v53  ;;  %v178_v16 = vld [vmem:[#allocation2 + $0x250] sm:$0xff] }
  0xf3   :  { %1037 = vmatpush.msra.mxu3 %v334_v54  ;;  %979 = vmatpush.msra.mxu0 %v134_v55  ;;  %v242_v17 = vld [vmem:[#allocation2 + $0x450] sm:$0xff] }
  0xf4   :  { %999 = vmatpush.msra.mxu1 %v198_v56  ;;  %1019 = vmatpush.msra.mxu2 %v262_v57  ;;  %v310_v18 = vld [vmem:[#allocation2 + $0x670] sm:$0xff] }
  0xf5   :  { %1038 = vmatpush.msra.mxu3 %v330_v58  ;;  %980 = vmatpush.msra.mxu0 %v130_v59  ;;  %v110_v19 = vld [vmem:[#allocation2 + $0x30] sm:$0xff] }
  0xf6   :  { %1000 = vmatpush.msra.mxu1 %v194_v60  ;;  %1020 = vmatpush.msra.mxu2 %v258_v61  ;;  %v174_v20 = vld [vmem:[#allocation2 + $0x230] sm:$0xff] }
  0xf7   :  { %1039 = vmatpush.msra.mxu3 %v326_v62  ;;  %981 = vmatpush.msra.mxu0 %v126_v63  ;;  %v238_v22 = vld [vmem:[#allocation2 + $0x430] sm:$0xff] }
  0xf8   :  { %1001 = vmatpush.msra.mxu1 %v190_v0  ;;  %1021 = vmatpush.msra.mxu2 %v254_v4  ;;  %v306_v23 = vld [vmem:[#allocation2 + $0x650] sm:$0xff] }
  0xf9   :  { %1040 = vmatpush.msra.mxu3 %v322_v5  ;;  %982 = vmatpush.msra.mxu0 %v122_v6  ;;  %v106_v24 = vld [vmem:[#allocation2 + $0x10] sm:$0xff] }
  0xfa   :  { %1002 = vmatpush.msra.mxu1 %v186_v7  ;;  %1022 = vmatpush.msra.mxu2 %v250_v8  ;;  %v170_v25 = vld [vmem:[#allocation2 + $0x210] sm:$0xff] }
  0xfb   :  { %1041 = vmatpush.msra.mxu3 %v318_v10  ;;  %983 = vmatpush.msra.mxu0 %v118_v11  ;;  %v234_v28 = vld [vmem:[#allocation2 + $0x410] sm:$0xff] }
  0xfc   :  { %1003 = vmatpush.msra.mxu1 %v182_v12  ;;  %1023 = vmatpush.msra.mxu2 %v246_v13  ;;  %v302_v29 = vld [vmem:[#allocation2 + $0x630] sm:$0xff] }
  0xfd   :  { %1042 = vmatpush.msra.mxu3 %v314_v14  ;;  %984 = vmatpush.msra.mxu0 %v114_v15  ;;  %v422_v30 = vld [vmem:[#allocation2 + $0x9f0] sm:$0xff] }
  0xfe   :  { %1004 = vmatpush.msra.mxu1 %v178_v16  ;;  %1024 = vmatpush.msra.mxu2 %v242_v17  ;;  %v486_v31 = vld [vmem:[#allocation2 + $0xbf0] sm:$0xff] }
  0xff   :  { %1043 = vmatpush.msra.mxu3 %v310_v18  ;;  %985 = vmatpush.msra.mxu0 %v110_v19  ;;  %v550_v33 = vld [vmem:[#allocation2 + $0xdf0] sm:$0xff] }
 0x100   :  { %1005 = vmatpush.msra.mxu1 %v174_v20  ;;  %1025 = vmatpush.msra.mxu2 %v238_v22  ;;  %v298_v34 = vld [vmem:[#allocation2 + $0x610] sm:$0xff] }
 0x101   :  { %1044 = vmatpush.msra.mxu3 %v306_v23  ;;  %986 = vmatpush.msra.mxu0 %v106_v24  ;;  %v418_v1 = vld [vmem:[#allocation2 + $0x9d0] sm:$0xff] }
 0x102   :  { %1006 = vmatpush.msra.mxu1 %v170_v25  ;;  %1026 = vmatpush.msra.mxu2 %v234_v28  ;;  %v482_v35 = vld [vmem:[#allocation2 + $0xbd0] sm:$0xff]  ;;  %v1989_v25 = vld.sshfl [vmem:[#allocation1] sm:$0xff pattern:$0x73625140] }
 0x103   :  { %1045 = vmatpush.msra.mxu3 %v302_v29  ;;  %1051 = vmatpush.msrb.mxu0 %v422_v30  ;;  %v546_v2 = vld [vmem:[#allocation2 + $0xdd0] sm:$0xff] }
 0x104   :  { %1071 = vmatpush.msrb.mxu1 %v486_v31  ;;  %v614_v36 = vld [vmem:[#allocation2 + $0xff0] sm:$0xff]  ;;  %1091 = vmatpush.msrb.mxu2 %v550_v33  ;;  %v1993_v33 = vld.sshfl [vmem:[#allocation1 + $0x8] sm:$0xff pattern:$0x73625140] }
 0x105   :  { %1046 = vmatpush.msra.mxu3 %v298_v34  ;;  %v414_v37 = vld [vmem:[#allocation2 + $0x9b0] sm:$0xff]  ;;  %1052 = vmatpush.msrb.mxu0 %v418_v1 }
 0x106   :  { %v478_v38 = vld [vmem:[#allocation2 + $0xbb0] sm:$0xff]  ;;  %1072 = vmatpush.msrb.mxu1 %v482_v35  ;;  %1092 = vmatpush.msrb.mxu2 %v546_v2 }
 0x107   :  { %v542_v39 = vld [vmem:[#allocation2 + $0xdb0] sm:$0xff]  ;;  %1111 = vmatpush.msrb.mxu3 %v614_v36  ;;  %1053 = vmatpush.msrb.mxu0 %v414_v37  ;;  %v231_v36 = vld [vmem:[#allocation2 + $0x3f8] sm:$0xff] }
 0x108   :  { %v610_v40 = vld [vmem:[#allocation2 + $0xfd0] sm:$0xff]  ;;  %1073 = vmatpush.msrb.mxu1 %v478_v38  ;;  %1093 = vmatpush.msrb.mxu2 %v542_v39  ;;  %v295_v37 = vld [vmem:[#allocation2 + $0x5f8] sm:$0xff] }
 0x109   :  { %v410_v41 = vld [vmem:[#allocation2 + $0x990] sm:$0xff]  ;;  %1112 = vmatpush.msrb.mxu3 %v610_v40  ;;  %1027 = vmatmul.f32.vlgmr.msra.gmra.mxu2 %v1960_v3  ;;  %v163_v39 = vld [vmem:[#allocation2 + $0x1d8] sm:$0xff] }
 0x10a   :  { %v474_v42 = vld [vmem:[#allocation2 + $0xb90] sm:$0xff]  ;;  %1054 = vmatpush.msrb.mxu0 %v410_v41  ;;  %1047 = vmatmul.f32.vlgmr.msra.gmra.mxu3 %v1965_v9  ;;  %v167_v9 = vld [vmem:[#allocation2 + $0x1f8] sm:$0xff] }
 0x10b   :  { %v538_v43 = vld [vmem:[#allocation2 + $0xd90] sm:$0xff]  ;;  %1074 = vmatpush.msrb.mxu1 %v474_v42  ;;  %987 = vmatmul.f32.vlgmr.msra.gmra.mxu0 %v1989_v25  ;;  %v227_v40 = vld [vmem:[#allocation2 + $0x3d8] sm:$0xff] }
 0x10c   :  { %v606_v44 = vld [vmem:[#allocation2 + $0xfb0] sm:$0xff]  ;;  %1094 = vmatpush.msrb.mxu2 %v538_v43  ;;  %1007 = vmatmul.f32.vlgmr.msra.gmra.mxu1 %v1993_v33  ;;  %v291_v41 = vld [vmem:[#allocation2 + $0x5d8] sm:$0xff] }
 0x10d   :  { %v406_v45 = vld [vmem:[#allocation2 + $0x970] sm:$0xff]  ;;  %1113 = vmatpush.msrb.mxu3 %v606_v44  ;;  %v359_v42 = vld [vmem:[#allocation2 + $0x7f8] sm:$0xff] }
 0x10e   :  { %v470_v46 = vld [vmem:[#allocation2 + $0xb70] sm:$0xff]  ;;  %1055 = vmatpush.msrb.mxu0 %v406_v45  ;;  %v159_v43 = vld [vmem:[#allocation2 + $0x1b8] sm:$0xff] }
 0x10f   :  { %v534_v47 = vld [vmem:[#allocation2 + $0xd70] sm:$0xff]  ;;  %1075 = vmatpush.msrb.mxu1 %v470_v46  ;;  %v223_v44 = vld [vmem:[#allocation2 + $0x3b8] sm:$0xff] }
 0x110   :  { %v602_v48 = vld [vmem:[#allocation2 + $0xf90] sm:$0xff]  ;;  %1095 = vmatpush.msrb.mxu2 %v534_v47  ;;  %v287_v45 = vld [vmem:[#allocation2 + $0x5b8] sm:$0xff] }
 0x111   :  { %v402_v49 = vld [vmem:[#allocation2 + $0x950] sm:$0xff]  ;;  %1114 = vmatpush.msrb.mxu3 %v602_v48  ;;  %v355_v46 = vld [vmem:[#allocation2 + $0x7d8] sm:$0xff] }
 0x112   :  { %v466_v50 = vld [vmem:[#allocation2 + $0xb50] sm:$0xff]  ;;  %1056 = vmatpush.msrb.mxu0 %v402_v49  ;;  %v219_v47 = vld [vmem:[#allocation2 + $0x398] sm:$0xff] }
 0x113   :  { %v530_v51 = vld [vmem:[#allocation2 + $0xd50] sm:$0xff]  ;;  %1076 = vmatpush.msrb.mxu1 %v466_v50  ;;  %v283_v48 = vld [vmem:[#allocation2 + $0x598] sm:$0xff] }
 0x114   :  { %v598_v52 = vld [vmem:[#allocation2 + $0xf70] sm:$0xff]  ;;  %1096 = vmatpush.msrb.mxu2 %v530_v51  ;;  %v351_v49 = vld [vmem:[#allocation2 + $0x7b8] sm:$0xff] }
 0x115   :  { %v398_v53 = vld [vmem:[#allocation2 + $0x930] sm:$0xff]  ;;  %1115 = vmatpush.msrb.mxu3 %v598_v52  ;;  %v279_v50 = vld [vmem:[#allocation2 + $0x578] sm:$0xff] }
 0x116   :  { %v462_v54 = vld [vmem:[#allocation2 + $0xb30] sm:$0xff]  ;;  %1057 = vmatpush.msrb.mxu0 %v398_v53  ;;  %v347_v51 = vld [vmem:[#allocation2 + $0x798] sm:$0xff] }
 0x117   :  { %v526_v55 = vld [vmem:[#allocation2 + $0xd30] sm:$0xff]  ;;  %1077 = vmatpush.msrb.mxu1 %v462_v54  ;;  %v147_v52 = vld [vmem:[#allocation2 + $0x158] sm:$0xff] }
 0x118   :  { %v594_v56 = vld [vmem:[#allocation2 + $0xf50] sm:$0xff]  ;;  %1097 = vmatpush.msrb.mxu2 %v526_v55  ;;  %v211_v53 = vld [vmem:[#allocation2 + $0x358] sm:$0xff] }
 0x119   :  { %v394_v57 = vld [vmem:[#allocation2 + $0x910] sm:$0xff]  ;;  %1116 = vmatpush.msrb.mxu3 %v594_v56  ;;  %v343_v54 = vld [vmem:[#allocation2 + $0x778] sm:$0xff] }
 0x11a   :  { %v458_v58 = vld [vmem:[#allocation2 + $0xb10] sm:$0xff]  ;;  %1058 = vmatpush.msrb.mxu0 %v394_v57  ;;  %v143_v55 = vld [vmem:[#allocation2 + $0x138] sm:$0xff] }
 0x11b   :  { %v522_v59 = vld [vmem:[#allocation2 + $0xd10] sm:$0xff]  ;;  %1078 = vmatpush.msrb.mxu1 %v458_v58  ;;  %v207_v56 = vld [vmem:[#allocation2 + $0x338] sm:$0xff] }
 0x11c   :  { %v590_v60 = vld [vmem:[#allocation2 + $0xf30] sm:$0xff]  ;;  %1098 = vmatpush.msrb.mxu2 %v522_v59  ;;  %v271_v57 = vld [vmem:[#allocation2 + $0x538] sm:$0xff] }
 0x11d   :  { %v390_v61 = vld [vmem:[#allocation2 + $0x8f0] sm:$0xff]  ;;  %1117 = vmatpush.msrb.mxu3 %v590_v60  ;;  %v339_v58 = vld [vmem:[#allocation2 + $0x758] sm:$0xff] }
 0x11e   :  { %v454_v62 = vld [vmem:[#allocation2 + $0xaf0] sm:$0xff]  ;;  %1059 = vmatpush.msrb.mxu0 %v390_v61  ;;  %v139_v59 = vld [vmem:[#allocation2 + $0x118] sm:$0xff] }
 0x11f   :  { %v518_v63 = vld [vmem:[#allocation2 + $0xcf0] sm:$0xff]  ;;  %1079 = vmatpush.msrb.mxu1 %v454_v62  ;;  %v203_v60 = vld [vmem:[#allocation2 + $0x318] sm:$0xff] }
 0x120   :  { %v586_v0 = vld [vmem:[#allocation2 + $0xf10] sm:$0xff]  ;;  %1099 = vmatpush.msrb.mxu2 %v518_v63  ;;  %v267_v61 = vld [vmem:[#allocation2 + $0x518] sm:$0xff] }
 0x121   :  { %v386_v4 = vld [vmem:[#allocation2 + $0x8d0] sm:$0xff]  ;;  %1118 = vmatpush.msrb.mxu3 %v586_v0  ;;  %v335_v62 = vld [vmem:[#allocation2 + $0x738] sm:$0xff] }
 0x122   :  { %v450_v5 = vld [vmem:[#allocation2 + $0xad0] sm:$0xff]  ;;  %1060 = vmatpush.msrb.mxu0 %v386_v4  ;;  %v135_v63 = vld [vmem:[#allocation2 + $0xf8] sm:$0xff] }
 0x123   :  { %v514_v6 = vld [vmem:[#allocation2 + $0xcd0] sm:$0xff]  ;;  %1080 = vmatpush.msrb.mxu1 %v450_v5  ;;  %v199_v0 = vld [vmem:[#allocation2 + $0x2f8] sm:$0xff] }
 0x124   :  { %v582_v7 = vld [vmem:[#allocation2 + $0xef0] sm:$0xff]  ;;  %1100 = vmatpush.msrb.mxu2 %v514_v6  ;;  %v263_v4 = vld [vmem:[#allocation2 + $0x4f8] sm:$0xff] }
 0x125   :  { %v382_v8 = vld [vmem:[#allocation2 + $0x8b0] sm:$0xff]  ;;  %1119 = vmatpush.msrb.mxu3 %v582_v7  ;;  %v331_v5 = vld [vmem:[#allocation2 + $0x718] sm:$0xff] }
 0x126   :  { %v446_v10 = vld [vmem:[#allocation2 + $0xab0] sm:$0xff]  ;;  %1061 = vmatpush.msrb.mxu0 %v382_v8  ;;  %v131_v6 = vld [vmem:[#allocation2 + $0xd8] sm:$0xff] }
 0x127   :  { %v510_v11 = vld [vmem:[#allocation2 + $0xcb0] sm:$0xff]  ;;  %1081 = vmatpush.msrb.mxu1 %v446_v10  ;;  %v195_v7 = vld [vmem:[#allocation2 + $0x2d8] sm:$0xff] }
 0x128   :  { %v578_v12 = vld [vmem:[#allocation2 + $0xed0] sm:$0xff]  ;;  %1101 = vmatpush.msrb.mxu2 %v510_v11  ;;  %v259_v8 = vld [vmem:[#allocation2 + $0x4d8] sm:$0xff] }
 0x129   :  { %v378_v13 = vld [vmem:[#allocation2 + $0x890] sm:$0xff]  ;;  %1120 = vmatpush.msrb.mxu3 %v578_v12  ;;  %v327_v10 = vld [vmem:[#allocation2 + $0x6f8] sm:$0xff] }
 0x12a   :  { %v442_v14 = vld [vmem:[#allocation2 + $0xa90] sm:$0xff]  ;;  %1062 = vmatpush.msrb.mxu0 %v378_v13  ;;  %v127_v11 = vld [vmem:[#allocation2 + $0xb8] sm:$0xff] }
 0x12b   :  { %v506_v15 = vld [vmem:[#allocation2 + $0xc90] sm:$0xff]  ;;  %1082 = vmatpush.msrb.mxu1 %v442_v14  ;;  %v191_v12 = vld [vmem:[#allocation2 + $0x2b8] sm:$0xff] }
 0x12c   :  { %v574_v16 = vld [vmem:[#allocation2 + $0xeb0] sm:$0xff]  ;;  %1102 = vmatpush.msrb.mxu2 %v506_v15  ;;  %v255_v13 = vld [vmem:[#allocation2 + $0x4b8] sm:$0xff] }
 0x12d   :  { %v374_v17 = vld [vmem:[#allocation2 + $0x870] sm:$0xff]  ;;  %1121 = vmatpush.msrb.mxu3 %v574_v16  ;;  %v323_v14 = vld [vmem:[#allocation2 + $0x6d8] sm:$0xff] }
 0x12e   :  { %v438_v18 = vld [vmem:[#allocation2 + $0xa70] sm:$0xff]  ;;  %1063 = vmatpush.msrb.mxu0 %v374_v17  ;;  %v123_v15 = vld [vmem:[#allocation2 + $0x98] sm:$0xff] }
 0x12f   :  { %v502_v19 = vld [vmem:[#allocation2 + $0xc70] sm:$0xff]  ;;  %1083 = vmatpush.msrb.mxu1 %v438_v18  ;;  %v187_v16 = vld [vmem:[#allocation2 + $0x298] sm:$0xff] }
 0x130   :  { %v570_v20 = vld [vmem:[#allocation2 + $0xe90] sm:$0xff]  ;;  %1103 = vmatpush.msrb.mxu2 %v502_v19  ;;  %v251_v17 = vld [vmem:[#allocation2 + $0x498] sm:$0xff] }
 0x131   :  { %v370_v22 = vld [vmem:[#allocation2 + $0x850] sm:$0xff]  ;;  %1122 = vmatpush.msrb.mxu3 %v570_v20  ;;  %v319_v18 = vld [vmem:[#allocation2 + $0x6b8] sm:$0xff] }
 0x132   :  { %v434_v23 = vld [vmem:[#allocation2 + $0xa50] sm:$0xff]  ;;  %1064 = vmatpush.msrb.mxu0 %v370_v22  ;;  %v119_v19 = vld [vmem:[#allocation2 + $0x78] sm:$0xff] }
 0x133   :  { %v498_v24 = vld [vmem:[#allocation2 + $0xc50] sm:$0xff]  ;;  %1084 = vmatpush.msrb.mxu1 %v434_v23  ;;  %v183_v20 = vld [vmem:[#allocation2 + $0x278] sm:$0xff] }
 0x134   :  { %v566_v28 = vld [vmem:[#allocation2 + $0xe70] sm:$0xff]  ;;  %1104 = vmatpush.msrb.mxu2 %v498_v24  ;;  %v247_v22 = vld [vmem:[#allocation2 + $0x478] sm:$0xff] }
 0x135   :  { %v366_v29 = vld [vmem:[#allocation2 + $0x830] sm:$0xff]  ;;  %1123 = vmatpush.msrb.mxu3 %v566_v28  ;;  %v315_v23 = vld [vmem:[#allocation2 + $0x698] sm:$0xff] }
 0x136   :  { %v430_v30 = vld [vmem:[#allocation2 + $0xa30] sm:$0xff]  ;;  %1065 = vmatpush.msrb.mxu0 %v366_v29  ;;  %v115_v24 = vld [vmem:[#allocation2 + $0x58] sm:$0xff] }
 0x137   :  { %v494_v3 = vld [vmem:[#allocation2 + $0xc30] sm:$0xff]  ;;  %1085 = vmatpush.msrb.mxu1 %v430_v30  ;;  %v179_v28 = vld [vmem:[#allocation2 + $0x258] sm:$0xff] }
 0x138   :  { %v562_v31 = vld [vmem:[#allocation2 + $0xe50] sm:$0xff]  ;;  %1105 = vmatpush.msrb.mxu2 %v494_v3  ;;  %v243_v29 = vld [vmem:[#allocation2 + $0x458] sm:$0xff] }
 0x139   :  { %v362_v34 = vld [vmem:[#allocation2 + $0x810] sm:$0xff]  ;;  %1124 = vmatpush.msrb.mxu3 %v562_v31  ;;  %v311_v30 = vld [vmem:[#allocation2 + $0x678] sm:$0xff] }
 0x13a   :  { %v426_v1 = vld [vmem:[#allocation2 + $0xa10] sm:$0xff]  ;;  %1066 = vmatpush.msrb.mxu0 %v362_v34  ;;  %v111_v3 = vld [vmem:[#allocation2 + $0x38] sm:$0xff] }
 0x13b   :  { %v490_v35 = vld [vmem:[#allocation2 + $0xc10] sm:$0xff]  ;;  %1086 = vmatpush.msrb.mxu1 %v426_v1  ;;  %1067 = vmatmul.f32.vlgmr.msrb.gmra.mxu0 %v1970_v26  ;;  %v151_v26 = vld [vmem:[#allocation2 + $0x178] sm:$0xff] }
 0x13c   :  { %v558_v2 = vld [vmem:[#allocation2 + $0xe30] sm:$0xff]  ;;  %1106 = vmatpush.msrb.mxu2 %v490_v35  ;;  %1131 = vmatpush.msra.mxu0 %v167_v9  ;;  %v175_v31 = vld [vmem:[#allocation2 + $0x238] sm:$0xff] }
 0x13d   :  { %1125 = vmatpush.msrb.mxu3 %v558_v2  ;;  %v554_v38 = vld [vmem:[#allocation2 + $0xe10] sm:$0xff]  ;;  %1107 = vmatmul.f32.vlgmr.msrb.gmra.mxu2 %v1968_v21  ;;  %v155_v21 = vld [vmem:[#allocation2 + $0x198] sm:$0xff] }
 0x13e   :  { %1151 = vmatpush.msra.mxu1 %v231_v36  ;;  %1171 = vmatpush.msra.mxu2 %v295_v37  ;;  %v239_v34 = vld [vmem:[#allocation2 + $0x438] sm:$0xff] }
 0x13f   :  { %1126 = vmatpush.msrb.mxu3 %v554_v38  ;;  %1132 = vmatpush.msra.mxu0 %v163_v39  ;;  %v307_v1 = vld [vmem:[#allocation2 + $0x658] sm:$0xff] }
 0x140   :  { %1127 = vmatmul.f32.vlgmr.msrb.gmra.mxu3 %v1973_v27  ;;  %1152 = vmatpush.msra.mxu1 %v227_v40  ;;  %v215_v27 = vld [vmem:[#allocation2 + $0x378] sm:$0xff] }
 0x141   :  { %1172 = vmatpush.msra.mxu2 %v291_v41  ;;  %1191 = vmatpush.msra.mxu3 %v359_v42  ;;  %v107_v35 = vld [vmem:[#allocation2 + $0x18] sm:$0xff] }
 0x142   :  { %1087 = vmatmul.f32.vlgmr.msrb.gmra.mxu1 %v1976_v32  ;;  %1133 = vmatpush.msra.mxu0 %v159_v43  ;;  %v275_v32 = vld [vmem:[#allocation2 + $0x558] sm:$0xff] }
 0x143   :  { %1153 = vmatpush.msra.mxu1 %v223_v44  ;;  %1173 = vmatpush.msra.mxu2 %v287_v45  ;;  %v171_v2 = vld [vmem:[#allocation2 + $0x218] sm:$0xff] }
 0x144   :  { %1192 = vmatpush.msra.mxu3 %v355_v46  ;;  %1134 = vmatpush.msra.mxu0 %v155_v21  ;;  %v235_v9 = vld [vmem:[#allocation2 + $0x418] sm:$0xff] }
 0x145   :  { %1154 = vmatpush.msra.mxu1 %v219_v47  ;;  %1174 = vmatpush.msra.mxu2 %v283_v48  ;;  %v303_v36 = vld [vmem:[#allocation2 + $0x638] sm:$0xff] }
 0x146   :  { %1193 = vmatpush.msra.mxu3 %v351_v49  ;;  %1135 = vmatpush.msra.mxu0 %v151_v26  ;;  %v423_v37 = vld [vmem:[#allocation2 + $0x9f8] sm:$0xff] }
 0x147   :  { %1155 = vmatpush.msra.mxu1 %v215_v27  ;;  %1175 = vmatpush.msra.mxu2 %v279_v50  ;;  %v487_v38 = vld [vmem:[#allocation2 + $0xbf8] sm:$0xff] }
 0x148   :  { %1194 = vmatpush.msra.mxu3 %v347_v51  ;;  %1136 = vmatpush.msra.mxu0 %v147_v52  ;;  %v551_v39 = vld [vmem:[#allocation2 + $0xdf8] sm:$0xff] }
 0x149   :  { %1156 = vmatpush.msra.mxu1 %v211_v53  ;;  %1176 = vmatpush.msra.mxu2 %v275_v32  ;;  %v299_v40 = vld [vmem:[#allocation2 + $0x618] sm:$0xff] }
 0x14a   :  { %1195 = vmatpush.msra.mxu3 %v343_v54  ;;  %1137 = vmatpush.msra.mxu0 %v143_v55  ;;  %v419_v41 = vld [vmem:[#allocation2 + $0x9d8] sm:$0xff] }
 0x14b   :  { %1157 = vmatpush.msra.mxu1 %v207_v56  ;;  %1177 = vmatpush.msra.mxu2 %v271_v57  ;;  %v483_v42 = vld [vmem:[#allocation2 + $0xbd8] sm:$0xff] }
 0x14c   :  { %1196 = vmatpush.msra.mxu3 %v339_v58  ;;  %1138 = vmatpush.msra.mxu0 %v139_v59  ;;  %v547_v43 = vld [vmem:[#allocation2 + $0xdd8] sm:$0xff] }
 0x14d   :  { %1158 = vmatpush.msra.mxu1 %v203_v60  ;;  %1178 = vmatpush.msra.mxu2 %v267_v61  ;;  %v615_v44 = vld [vmem:[#allocation2 + $0xff8] sm:$0xff]  ;;  %v2000_v61 = vpop.f32.mrf.mxu0 }
 0x14e   :  { %1197 = vmatpush.msra.mxu3 %v335_v62  ;;  %1139 = vmatpush.msra.mxu0 %v135_v63  ;;  %v415_v45 = vld [vmem:[#allocation2 + $0x9b8] sm:$0xff] }
 0x14f   :  { %1159 = vmatpush.msra.mxu1 %v199_v0  ;;  %1179 = vmatpush.msra.mxu2 %v263_v4  ;;  %v479_v46 = vld [vmem:[#allocation2 + $0xbb8] sm:$0xff] }
 0x150   :  { %1198 = vmatpush.msra.mxu3 %v331_v5  ;;  %1140 = vmatpush.msra.mxu0 %v131_v6  ;;  %v543_v21 = vld [vmem:[#allocation2 + $0xdb8] sm:$0xff] }
 0x151   :  { %1160 = vmatpush.msra.mxu1 %v195_v7  ;;  %1180 = vmatpush.msra.mxu2 %v259_v8  ;;  %v611_v47 = vld [vmem:[#allocation2 + $0xfd8] sm:$0xff] }
 0x152   :  { %1199 = vmatpush.msra.mxu3 %v327_v10  ;;  %1141 = vmatpush.msra.mxu0 %v127_v11  ;;  %v411_v48 = vld [vmem:[#allocation2 + $0x998] sm:$0xff]  ;;  %v2002_v10 = vpop.f32.mrf.mxu1 }
 0x153   :  { %1161 = vmatpush.msra.mxu1 %v191_v12  ;;  %1181 = vmatpush.msra.mxu2 %v255_v13  ;;  %v475_v49 = vld [vmem:[#allocation2 + $0xb98] sm:$0xff] }
 0x154   :  { %1200 = vmatpush.msra.mxu3 %v323_v14  ;;  %1142 = vmatpush.msra.mxu0 %v123_v15  ;;  %v539_v26 = vld [vmem:[#allocation2 + $0xd98] sm:$0xff] }
 0x155   :  { %1162 = vmatpush.msra.mxu1 %v187_v16  ;;  %1182 = vmatpush.msra.mxu2 %v251_v17  ;;  %v607_v27 = vld [vmem:[#allocation2 + $0xfb8] sm:$0xff] }
 0x156   :  { %1201 = vmatpush.msra.mxu3 %v319_v18  ;;  %1143 = vmatpush.msra.mxu0 %v119_v19  ;;  %v407_v50 = vld [vmem:[#allocation2 + $0x978] sm:$0xff]  ;;  %v2004_v19 = vpop.f32.mrf.mxu2 }
 0x157   :  { %1163 = vmatpush.msra.mxu1 %v183_v20  ;;  %1183 = vmatpush.msra.mxu2 %v247_v22  ;;  %v471_v51 = vld [vmem:[#allocation2 + $0xb78] sm:$0xff] }
 0x158   :  { %1202 = vmatpush.msra.mxu3 %v315_v23  ;;  %1144 = vmatpush.msra.mxu0 %v115_v24  ;;  %v535_v52 = vld [vmem:[#allocation2 + $0xd78] sm:$0xff] }
 0x159   :  { %1164 = vmatpush.msra.mxu1 %v179_v28  ;;  %1184 = vmatpush.msra.mxu2 %v243_v29  ;;  %v603_v53 = vld [vmem:[#allocation2 + $0xf98] sm:$0xff]  ;;  %v2006_v28 = vld [vmem:[#allocation10] sm:$0xff]  ;;  %v2008_v29 = vpop.f32.mrf.mxu0 }
 0x15a   :  { %1203 = vmatpush.msra.mxu3 %v311_v30  ;;  %1145 = vmatpush.msra.mxu0 %v111_v3  ;;  %v403_v32 = vld [vmem:[#allocation2 + $0x958] sm:$0xff] }
 0x15b   :  { %1165 = vmatpush.msra.mxu1 %v175_v31  ;;  %1185 = vmatpush.msra.mxu2 %v239_v34  ;;  %v467_v54 = vld [vmem:[#allocation2 + $0xb58] sm:$0xff]  ;;  %v2010_v34 = vpop.f32.mrf.mxu3 }
 0x15c   :  { %1204 = vmatpush.msra.mxu3 %v307_v1  ;;  %1146 = vmatpush.msra.mxu0 %v107_v35  ;;  %v531_v55 = vld [vmem:[#allocation2 + $0xd58] sm:$0xff]  ;;  %v618_v35 = vperm.slane %v2006_v28, 0 }
 0x15d   :  { %1166 = vmatpush.msra.mxu1 %v171_v2  ;;  %1186 = vmatpush.msra.mxu2 %v235_v9  ;;  %v599_v56 = vld [vmem:[#allocation2 + $0xf78] sm:$0xff]  ;;  %v1730_v2 = vld.sshfl [vmem:[#allocation1 + $0x10] sm:$0xff pattern:$0x73625140] }
 0x15e   :  { %1205 = vmatpush.msra.mxu3 %v303_v36  ;;  %1211 = vmatpush.msrb.mxu0 %v423_v37  ;;  %v399_v57 = vld [vmem:[#allocation2 + $0x938] sm:$0xff]  ;;  %v619_v36 = vperm.slane %v2006_v28, 4  ;;  %v2014_v37 = vpop.f32.mrf.mxu1 }
 0x15f   :  { %1231 = vmatpush.msrb.mxu1 %v487_v38  ;;  %1251 = vmatpush.msrb.mxu2 %v551_v39  ;;  %v463_v58 = vld [vmem:[#allocation2 + $0xb38] sm:$0xff] }
 0x160   :  { %1206 = vmatpush.msra.mxu3 %v299_v40  ;;  %1212 = vmatpush.msrb.mxu0 %v419_v41  ;;  %v527_v59 = vld [vmem:[#allocation2 + $0xd38] sm:$0xff]  ;;  %v1731_v41 = vld.sshfl [vmem:[#allocation1 + $0x18] sm:$0xff pattern:$0x73625140] }
 0x161   :  { %1232 = vmatpush.msrb.mxu1 %v483_v42  ;;  %1252 = vmatpush.msrb.mxu2 %v547_v43  ;;  %v595_v60 = vld [vmem:[#allocation2 + $0xf58] sm:$0xff] }
 0x162   :  { %1271 = vmatpush.msrb.mxu3 %v615_v44  ;;  %1213 = vmatpush.msrb.mxu0 %v415_v45  ;;  %v395_v62 = vld [vmem:[#allocation2 + $0x918] sm:$0xff]  ;;  %v626_v44 = vperm.slane %v618_v35, 0  ;;  %v1377_v35 = vld [vmem:[#allocation5 + $0x290] sm:$0xff] }
 0x163   :  { %1233 = vmatpush.msrb.mxu1 %v479_v46  ;;  %1253 = vmatpush.msrb.mxu2 %v543_v21  ;;  %v459_v63 = vld [vmem:[#allocation2 + $0xb18] sm:$0xff]  ;;  %v627_v21 = vperm.slane %v619_v36, 0  ;;  %v1309_v36 = vld [vmem:[#allocation5 + $0x70] sm:$0xff] }
 0x164   :  { %1272 = vmatpush.msrb.mxu3 %v611_v47  ;;  %1214 = vmatpush.msrb.mxu0 %v411_v48  ;;  %v523_v0 = vld [vmem:[#allocation2 + $0xd18] sm:$0xff]  ;;  %v2017_v47 = vpop.f32.mrf.mxu2 }
 0x165   :  { %1234 = vmatpush.msrb.mxu1 %v475_v49  ;;  %1254 = vmatpush.msrb.mxu2 %v539_v26  ;;  %v591_v4 = vld [vmem:[#allocation2 + $0xf38] sm:$0xff] }
 0x166   :  { %1273 = vmatpush.msrb.mxu3 %v607_v27  ;;  %1215 = vmatpush.msrb.mxu0 %v407_v50  ;;  %v391_v5 = vld [vmem:[#allocation2 + $0x8f8] sm:$0xff]  ;;  %v1325_v50 = vld [vmem:[#allocation5 + $0xf0] sm:$0xff] }
 0x167   :  { %1235 = vmatpush.msrb.mxu1 %v471_v51  ;;  %1255 = vmatpush.msrb.mxu2 %v535_v52  ;;  %v455_v6 = vld [vmem:[#allocation2 + $0xaf8] sm:$0xff]  ;;  %v669_v51 = vadd.f32 %v2000_v61, %v626_v44  ;;  %v1357_v52 = vld [vmem:[#allocation5 + $0x1f0] sm:$0xff] }
 0x168   :  { %1274 = vmatpush.msrb.mxu3 %v603_v53  ;;  %1216 = vmatpush.msrb.mxu0 %v403_v32  ;;  %v519_v7 = vld [vmem:[#allocation2 + $0xcf8] sm:$0xff]  ;;  %v1734_v61 = vld.sshfl [vmem:[#allocation1 + $0x38] sm:$0xff pattern:$0x73625140] }
 0x169   :  { %1236 = vmatpush.msrb.mxu1 %v467_v54  ;;  %1256 = vmatpush.msrb.mxu2 %v531_v55  ;;  %v587_v8 = vld [vmem:[#allocation2 + $0xf18] sm:$0xff]  ;;  %v2021_v54 = vpop.f32.mrf.mxu3  ;;  %v1732_v55 = vld.sshfl [vmem:[#allocation1 + $0x30] sm:$0xff pattern:$0x73625140] }
 0x16a   :  { %1275 = vmatpush.msrb.mxu3 %v599_v56  ;;  %1217 = vmatpush.msrb.mxu0 %v399_v57  ;;  %v387_v11 = vld [vmem:[#allocation2 + $0x8d8] sm:$0xff]  ;;  %v1323_v56 = vld [vmem:[#allocation5 + $0xe0] sm:$0xff] }
 0x16b   :  { %1237 = vmatpush.msrb.mxu1 %v463_v58  ;;  %1257 = vmatpush.msrb.mxu2 %v527_v59  ;;  %v451_v12 = vld [vmem:[#allocation2 + $0xad8] sm:$0xff]  ;;  %v1355_v57 = vld [vmem:[#allocation5 + $0x1e0] sm:$0xff]  ;;  %v1389_v58 = vld [vmem:[#allocation5 + $0x2f0] sm:$0xff]  ;;  %v689_v59 = vadd.f32 %v2002_v10, %v669_v51 }
 0x16c   :  { %1276 = vmatpush.msrb.mxu3 %v595_v60  ;;  %1218 = vmatpush.msrb.mxu0 %v395_v62  ;;  %v515_v13 = vld [vmem:[#allocation2 + $0xcd8] sm:$0xff]  ;;  %v1321_v62 = vld [vmem:[#allocation5 + $0xd0] sm:$0xff] }
 0x16d   :  { %1238 = vmatpush.msrb.mxu1 %v459_v63  ;;  %1258 = vmatpush.msrb.mxu2 %v523_v0  ;;  %v583_v14 = vld [vmem:[#allocation2 + $0xef8] sm:$0xff]  ;;  %v1353_v63 = vld [vmem:[#allocation5 + $0x1d0] sm:$0xff]  ;;  %v709_v10 = vadd.f32 %v2004_v19, %v689_v59  ;;  %v1295_v59 = vld [vmem:[#allocation5] sm:$0xff] }
 0x16e   :  { %1277 = vmatpush.msrb.mxu3 %v591_v4  ;;  %1219 = vmatpush.msrb.mxu0 %v391_v5  ;;  %v383_v15 = vld [vmem:[#allocation2 + $0x8b8] sm:$0xff]  ;;  %v868_v4 = vpop.f32.mrf.mxu2  ;;  %v1387_v5 = vld [vmem:[#allocation5 + $0x2e0] sm:$0xff]  ;;  %v1333_v51 = vld [vmem:[#allocation5 + $0x130] sm:$0xff] }
 0x16f   :  { %1239 = vmatpush.msrb.mxu1 %v455_v6  ;;  %1259 = vmatpush.msrb.mxu2 %v519_v7  ;;  %v447_v16 = vld [vmem:[#allocation2 + $0xab8] sm:$0xff]  ;;  %v1735_v6 = vld.sshfl [vmem:[#allocation1 + $0x28] sm:$0xff pattern:$0x73625140] }
 0x170   :  { %1278 = vmatpush.msrb.mxu3 %v587_v8  ;;  %1220 = vmatpush.msrb.mxu0 %v387_v11  ;;  %v511_v17 = vld [vmem:[#allocation2 + $0xcb8] sm:$0xff]  ;;  %v1319_v7 = vld [vmem:[#allocation5 + $0xc0] sm:$0xff]  ;;  %v1385_v11 = vld [vmem:[#allocation5 + $0x2d0] sm:$0xff] }
 0x171   :  { %1240 = vmatpush.msrb.mxu1 %v451_v12  ;;  %v579_v18 = vld [vmem:[#allocation2 + $0xed8] sm:$0xff]  ;;  %1260 = vmatpush.msrb.mxu2 %v515_v13  ;;  %v1351_v8 = vld [vmem:[#allocation5 + $0x1c0] sm:$0xff]  ;;  %v1317_v13 = vld [vmem:[#allocation5 + $0xb0] sm:$0xff] }
 0x172   :  { %1279 = vmatpush.msrb.mxu3 %v583_v14  ;;  %v379_v20 = vld [vmem:[#allocation2 + $0x898] sm:$0xff]  ;;  %1221 = vmatpush.msrb.mxu0 %v383_v15  ;;  %v1349_v14 = vld [vmem:[#allocation5 + $0x1b0] sm:$0xff]  ;;  %v888_v15 = vpop.f32.mrf.mxu3 }
 0x173   :  { %v443_v22 = vld [vmem:[#allocation2 + $0xa98] sm:$0xff]  ;;  %1241 = vmatpush.msrb.mxu1 %v447_v16  ;;  %1261 = vmatpush.msrb.mxu2 %v511_v17  ;;  %v1383_v16 = vld [vmem:[#allocation5 + $0x2c0] sm:$0xff] }
 0x174   :  { %v507_v23 = vld [vmem:[#allocation2 + $0xc98] sm:$0xff]  ;;  %1280 = vmatpush.msrb.mxu3 %v579_v18  ;;  %1222 = vmatpush.msrb.mxu0 %v379_v20  ;;  %v1315_v17 = vld [vmem:[#allocation5 + $0xa0] sm:$0xff]  ;;  %v1381_v20 = vld [vmem:[#allocation5 + $0x2b0] sm:$0xff] }
 0x175   :  { %v575_v24 = vld [vmem:[#allocation2 + $0xeb8] sm:$0xff]  ;;  %1242 = vmatpush.msrb.mxu1 %v443_v22  ;;  %1262 = vmatpush.msrb.mxu2 %v507_v23  ;;  %v1347_v18 = vld [vmem:[#allocation5 + $0x1a0] sm:$0xff]  ;;  %v729_v22 = vadd.f32 %v2010_v34, %v709_v10  ;;  %v1320_v10 = vld [vmem:[#allocation5 + $0xc8] sm:$0xff] }
 0x176   :  { %v375_v30 = vld [vmem:[#allocation2 + $0x878] sm:$0xff]  ;;  %1281 = vmatpush.msrb.mxu3 %v575_v24  ;;  %1187 = vmatmul.f32.vlgmr.msra.gmra.mxu2 %v1730_v2  ;;  %v1313_v24 = vld [vmem:[#allocation5 + $0x90] sm:$0xff] }
 0x177   :  { %v439_v3 = vld [vmem:[#allocation2 + $0xa78] sm:$0xff]  ;;  %1223 = vmatpush.msrb.mxu0 %v375_v30  ;;  %1207 = vmatmul.f32.vlgmr.msra.gmra.mxu3 %v1731_v41  ;;  %v1345_v30 = vld [vmem:[#allocation5 + $0x190] sm:$0xff]  ;;  %v749_v2 = vadd.f32 %v2008_v29, %v729_v22  ;;  %v1339_v41 = vld [vmem:[#allocation5 + $0x160] sm:$0xff]  ;;  %v948_v29 = vpop.f32.mrf.mxu2 }
 0x178   :  { %v503_v31 = vld [vmem:[#allocation2 + $0xc78] sm:$0xff]  ;;  %1243 = vmatpush.msrb.mxu1 %v439_v3  ;;  %1147 = vmatmul.f32.vlgmr.msra.gmra.mxu0 %v1989_v25  ;;  %v828_v25 = vpop.f32.mrf.mxu0  ;;  %v1379_v3 = vld [vmem:[#allocation5 + $0x2a0] sm:$0xff]  ;;  %v1421_v22 = vld [vmem:[#allocation5 + $0x3f0] sm:$0xff] }
 0x179   :  { %v571_v1 = vld [vmem:[#allocation2 + $0xe98] sm:$0xff]  ;;  %1263 = vmatpush.msrb.mxu2 %v503_v31  ;;  %1167 = vmatmul.f32.vlgmr.msra.gmra.mxu1 %v1993_v33  ;;  %v829_v32 = vadd.f32 %v828_v25, %v627_v21  ;;  %v848_v33 = vpop.f32.mrf.mxu1  ;;  %v1311_v31 = vld [vmem:[#allocation5 + $0x80] sm:$0xff]  ;;  %v1369_v25 = vld [vmem:[#allocation5 + $0x250] sm:$0xff] }
 0x17a   :  { %v371_v9 = vld [vmem:[#allocation2 + $0x858] sm:$0xff]  ;;  %1282 = vmatpush.msrb.mxu3 %v571_v1  ;;  %v1343_v1 = vld [vmem:[#allocation5 + $0x180] sm:$0xff] }
 0x17b   :  { %v435_v38 = vld [vmem:[#allocation2 + $0xa58] sm:$0xff]  ;;  %1224 = vmatpush.msrb.mxu0 %v371_v9  ;;  %v849_v0 = vadd.f32 %v848_v33, %v829_v32  ;;  %v1371_v21 = vld [vmem:[#allocation5 + $0x260] sm:$0xff]  ;;  %v1365_v33 = vld [vmem:[#allocation5 + $0x230] sm:$0xff] }
 0x17c   :  { %v499_v39 = vld [vmem:[#allocation2 + $0xc58] sm:$0xff]  ;;  %1244 = vmatpush.msrb.mxu1 %v435_v38  ;;  %v1341_v38 = vld [vmem:[#allocation5 + $0x170] sm:$0xff]  ;;  %v1331_v32 = vld [vmem:[#allocation5 + $0x120] sm:$0xff] }
 0x17d   :  { %v567_v40 = vld [vmem:[#allocation2 + $0xe78] sm:$0xff]  ;;  %1264 = vmatpush.msrb.mxu2 %v499_v39  ;;  %v869_v12 = vadd.f32 %v868_v4, %v849_v0  ;;  %v1375_v39 = vld [vmem:[#allocation5 + $0x280] sm:$0xff]  ;;  %v1361_v0 = vld [vmem:[#allocation5 + $0x210] sm:$0xff] }
 0x17e   :  { %v367_v42 = vld [vmem:[#allocation2 + $0x838] sm:$0xff]  ;;  %1283 = vmatpush.msrb.mxu3 %v567_v40  ;;  %v1307_v40 = vld [vmem:[#allocation5 + $0x60] sm:$0xff]  ;;  %v1324_v4 = vld [vmem:[#allocation5 + $0xe8] sm:$0xff] }
 0x17f   :  { %v431_v43 = vld [vmem:[#allocation2 + $0xa38] sm:$0xff]  ;;  %1225 = vmatpush.msrb.mxu0 %v367_v42  ;;  %v889_v23 = vadd.f32 %v888_v15, %v869_v12  ;;  %v1373_v42 = vld [vmem:[#allocation5 + $0x270] sm:$0xff]  ;;  %v1352_v12 = vld [vmem:[#allocation5 + $0x1c8] sm:$0xff] }
 0x180   :  { %v495_v45 = vld [vmem:[#allocation2 + $0xc38] sm:$0xff]  ;;  %1245 = vmatpush.msrb.mxu1 %v431_v43  ;;  %v908_v19 = vpop.f32.mrf.mxu0  ;;  %v769_v43 = vadd.f32 %v2014_v37, %v749_v2  ;;  %v968_v37 = vpop.f32.mrf.mxu3 }
 0x181   :  { %v563_v46 = vld [vmem:[#allocation2 + $0xe58] sm:$0xff]  ;;  %1265 = vmatpush.msrb.mxu2 %v495_v45  ;;  %v909_v9 = vadd.f32 %v908_v19, %v889_v23  ;;  %v928_v34 = vpop.f32.mrf.mxu1  ;;  %v1305_v45 = vld [vmem:[#allocation5 + $0x50] sm:$0xff]  ;;  %v1384_v23 = vld [vmem:[#allocation5 + $0x2c8] sm:$0xff] }
 0x182   :  { %v363_v48 = vld [vmem:[#allocation2 + $0x818] sm:$0xff]  ;;  %1284 = vmatpush.msrb.mxu3 %v563_v46  ;;  %v1337_v46 = vld [vmem:[#allocation5 + $0x150] sm:$0xff] }
 0x183   :  { %v427_v49 = vld [vmem:[#allocation2 + $0xa18] sm:$0xff]  ;;  %1226 = vmatpush.msrb.mxu0 %v363_v48  ;;  %v929_v44 = vadd.f32 %v928_v34, %v909_v9  ;;  %v1303_v48 = vld [vmem:[#allocation5 + $0x40] sm:$0xff] }
 0x184   :  { %v491_v26 = vld [vmem:[#allocation2 + $0xc18] sm:$0xff]  ;;  %1246 = vmatpush.msrb.mxu1 %v427_v49  ;;  %v1335_v49 = vld [vmem:[#allocation5 + $0x140] sm:$0xff] }
 0x185   :  { %v559_v27 = vld [vmem:[#allocation2 + $0xe38] sm:$0xff]  ;;  %1266 = vmatpush.msrb.mxu2 %v491_v26  ;;  %1429 = vmatpush.msra.mxu0 %v1325_v50  ;;  %v789_v26 = vadd.f32 %v2017_v47, %v769_v43  ;;  %v1301_v50 = vld [vmem:[#allocation5 + $0x30] sm:$0xff]  ;;  %v1419_v34 = vld [vmem:[#allocation5 + $0x3e0] sm:$0xff] }
 0x186   :  { %v555_v53 = vld [vmem:[#allocation2 + $0xe18] sm:$0xff]  ;;  %1285 = vmatpush.msrb.mxu3 %v559_v27  ;;  %1267 = vmatmul.f32.vlgmr.msrb.gmra.mxu2 %v1732_v55  ;;  %v949_v27 = vadd.f32 %v948_v29, %v929_v44  ;;  %v1297_v47 = vld [vmem:[#allocation5 + $0x10] sm:$0xff]  ;;  %v1376_v43 = vld [vmem:[#allocation5 + $0x288] sm:$0xff] }
 0x187   :  { %1449 = vmatpush.msra.mxu1 %v1357_v52  ;;  %v1733_v60 = vld.sshfl [vmem:[#allocation1 + $0x20] sm:$0xff pattern:$0x73625140]  ;;  %1430 = vmatpush.msra.mxu0 %v1323_v56  ;;  %v1367_v52 = vld [vmem:[#allocation5 + $0x240] sm:$0xff]  ;;  %v2030_v55 = vadd.f32 %v2021_v54, %v789_v26 }
 0x188   :  { %1286 = vmatpush.msrb.mxu3 %v555_v53  ;;  %1227 = vmatmul.f32.vlgmr.msrb.gmra.mxu0 %v1733_v60  ;;  %v1299_v53 = vld [vmem:[#allocation5 + $0x20] sm:$0xff]  ;;  %v2032_v56 = vadd.f32 %v968_v37, %v949_v27  ;;  %v1358_v54 = vld [vmem:[#allocation5 + $0x1f8] sm:$0xff] }
 0x189   :  { %1287 = vmatmul.f32.vlgmr.msrb.gmra.mxu3 %v1734_v61  ;;  %1450 = vmatpush.msra.mxu1 %v1355_v57  ;;  %v1329_v57 = vld [vmem:[#allocation5 + $0x110] sm:$0xff]  ;;  %v1327_v60 = vld [vmem:[#allocation5 + $0x100] sm:$0xff]  ;;  %v1291_v61 = vmax.f32 %v2030_v55, 0.0  ;;  %v1350_v15 = vld [vmem:[#allocation5 + $0x1b8] sm:$0xff]  ;;  %v1008_v26 = vpop.f32.mrf.mxu1 }
 0x18a   :  { %1247 = vmatmul.f32.vlgmr.msrb.gmra.mxu1 %v1735_v6  ;;  %1469 = vmatpush.msra.mxu2 %v1389_v58  ;;  %v1363_v58 = vld [vmem:[#allocation5 + $0x220] sm:$0xff]  ;;  %v1310_v2 = vld [vmem:[#allocation5 + $0x78] sm:$0xff] }
 0x18b   :  { %1431 = vmatpush.msra.mxu0 %v1321_v62  ;;  %1451 = vmatpush.msra.mxu1 %v1353_v63  ;;  %v1292_v62 = vmax.f32 %v2032_v56, 0.0  ;;  %v1326_v63 = vld [vmem:[#allocation5 + $0xf8] sm:$0xff]  ;;  %v1359_v6 = vld [vmem:[#allocation5 + $0x200] sm:$0xff]  ;;  %v1393_v56 = vld [vmem:[#allocation5 + $0x310] sm:$0xff] }
 0x18c   :  { %1470 = vmatpush.msra.mxu2 %v1387_v5  ;;  %v1356_v5 = vld [vmem:[#allocation5 + $0x1e8] sm:$0xff]  ;;  %1489 = vmatpush.msra.mxu3 %v1421_v22  ;;  %v1342_v9 = vld [vmem:[#allocation5 + $0x178] sm:$0xff]  ;;  %v1415_v44 = vld [vmem:[#allocation5 + $0x3c0] sm:$0xff] }
 0x18d   :  { %1432 = vmatpush.msra.mxu0 %v1319_v7  ;;  %1452 = vmatpush.msra.mxu1 %v1351_v8  ;;  %v1322_v7 = vld [vmem:[#allocation5 + $0xd8] sm:$0xff]  ;;  %v1411_v37 = vld [vmem:[#allocation5 + $0x3a0] sm:$0xff] }
 0x18e   :  { %1471 = vmatpush.msra.mxu2 %v1385_v11  ;;  %v1354_v8 = vld [vmem:[#allocation5 + $0x1d8] sm:$0xff]  ;;  %1490 = vmatpush.msra.mxu3 %v1419_v34  ;;  %v1395_v55 = vld [vmem:[#allocation5 + $0x320] sm:$0xff]  ;;  %v1408_v34 = vld [vmem:[#allocation5 + $0x388] sm:$0xff] }
 0x18f   :  { %1433 = vmatpush.msra.mxu0 %v1317_v13  ;;  %1453 = vmatpush.msra.mxu1 %v1349_v14  ;;  %v1390_v11 = vld [vmem:[#allocation5 + $0x2f8] sm:$0xff]  ;;  %v1388_v13 = vld [vmem:[#allocation5 + $0x2e8] sm:$0xff] }
 0x190   :  { %1472 = vmatpush.msra.mxu2 %v1383_v16  ;;  %v1318_v14 = vld [vmem:[#allocation5 + $0xb8] sm:$0xff]  ;;  %v2040_v16 = vld [vmem:[#allocation10 + $0x8] sm:$0xff] }
 0x191   :  { %1434 = vmatpush.msra.mxu0 %v1315_v17  ;;  %1454 = vmatpush.msra.mxu1 %v1347_v18  ;;  %v1386_v17 = vld [vmem:[#allocation5 + $0x2d8] sm:$0xff]  ;;  %v1316_v18 = vld [vmem:[#allocation5 + $0xa8] sm:$0xff]  ;;  %v620_v19 = vperm.slane %v2040_v16, 0 }
 0x192   :  { %1473 = vmatpush.msra.mxu2 %v1381_v20  ;;  %v1348_v20 = vld [vmem:[#allocation5 + $0x1a8] sm:$0xff] }
 0x193   :  { %1435 = vmatpush.msra.mxu0 %v1313_v24  ;;  %1455 = vmatpush.msra.mxu1 %v1345_v30  ;;  %v1314_v24 = vld [vmem:[#allocation5 + $0x98] sm:$0xff] }
 0x194   :  { %1474 = vmatpush.msra.mxu2 %v1379_v3  ;;  %v1346_v30 = vld [vmem:[#allocation5 + $0x198] sm:$0xff] }
 0x195   :  { %1436 = vmatpush.msra.mxu0 %v1311_v31  ;;  %1456 = vmatpush.msra.mxu1 %v1343_v1  ;;  %v1382_v3 = vld [vmem:[#allocation5 + $0x2b8] sm:$0xff]  ;;  %v1312_v31 = vld [vmem:[#allocation5 + $0x88] sm:$0xff] }
 0x196   :  { %1475 = vmatpush.msra.mxu2 %v1377_v35  ;;  %v1344_v1 = vld [vmem:[#allocation5 + $0x188] sm:$0xff] }
 0x197   :  { %1437 = vmatpush.msra.mxu0 %v1309_v36  ;;  %1457 = vmatpush.msra.mxu1 %v1341_v38  ;;  %v1380_v35 = vld [vmem:[#allocation5 + $0x2a8] sm:$0xff]  ;;  %v628_v36 = vperm.slane %v620_v19, 0  ;;  %v1378_v38 = vld [vmem:[#allocation5 + $0x298] sm:$0xff] }
 0x198   :  { %1476 = vmatpush.msra.mxu2 %v1375_v39  ;;  %v1417_v39 = vld [vmem:[#allocation5 + $0x3d0] sm:$0xff] }
 0x199   :  { %1438 = vmatpush.msra.mxu0 %v1307_v40  ;;  %1458 = vmatpush.msra.mxu1 %v1339_v41  ;;  %v1308_v40 = vld [vmem:[#allocation5 + $0x68] sm:$0xff] }
 0x19a   :  { %1477 = vmatpush.msra.mxu2 %v1373_v42  ;;  %v1340_v41 = vld [vmem:[#allocation5 + $0x168] sm:$0xff]  ;;  %v988_v42 = vpop.f32.mrf.mxu0  ;;  %1491 = vmatpush.msra.mxu3 %v1417_v39  ;;  %v1406_v39 = vld [vmem:[#allocation5 + $0x378] sm:$0xff] }
 0x19b   :  { %1439 = vmatpush.msra.mxu0 %v1305_v45  ;;  %1459 = vmatpush.msra.mxu1 %v1337_v46  ;;  %v1306_v45 = vld [vmem:[#allocation5 + $0x58] sm:$0xff]  ;;  %v989_v29 = vadd.f32 %v988_v42, %v628_v36  ;;  %v1412_v36 = vld [vmem:[#allocation5 + $0x3a8] sm:$0xff] }
 0x19c   :  { %1478 = vmatpush.msra.mxu2 %v1371_v21  ;;  %v1338_v46 = vld [vmem:[#allocation5 + $0x158] sm:$0xff]  ;;  %1492 = vmatpush.msra.mxu3 %v1415_v44  ;;  %v1400_v42 = vld [vmem:[#allocation5 + $0x348] sm:$0xff] }
 0x19d   :  { %1440 = vmatpush.msra.mxu0 %v1303_v48  ;;  %1460 = vmatpush.msra.mxu1 %v1335_v49  ;;  %v1374_v21 = vld [vmem:[#allocation5 + $0x278] sm:$0xff]  ;;  %v1413_v48 = vld [vmem:[#allocation5 + $0x3b0] sm:$0xff]  ;;  %v1304_v49 = vld [vmem:[#allocation5 + $0x48] sm:$0xff]  ;;  %v1009_v27 = vadd.f32 %v1008_v26, %v989_v29 }
 0x19e   :  { %1479 = vmatpush.msra.mxu2 %v1369_v25  ;;  %v1336_v25 = vld [vmem:[#allocation5 + $0x148] sm:$0xff]  ;;  %1493 = vmatpush.msra.mxu3 %v1413_v48 }
 0x19f   :  { %1441 = vmatpush.msra.mxu0 %v1301_v50  ;;  %1461 = vmatpush.msra.mxu1 %v1333_v51  ;;  %v1028_v50 = vpop.f32.mrf.mxu2  ;;  %v1372_v51 = vld [vmem:[#allocation5 + $0x268] sm:$0xff] }
 0x1a0   :  { %1480 = vmatpush.msra.mxu2 %v1367_v52  ;;  %v1302_v52 = vld [vmem:[#allocation5 + $0x38] sm:$0xff]  ;;  %1494 = vmatpush.msra.mxu3 %v1411_v37  ;;  %v1396_v44 = vld [vmem:[#allocation5 + $0x328] sm:$0xff] }
 0x1a1   :  { %1442 = vmatpush.msra.mxu0 %v1299_v53  ;;  %1462 = vmatpush.msra.mxu1 %v1331_v32  ;;  %v1334_v53 = vld [vmem:[#allocation5 + $0x138] sm:$0xff]  ;;  %v1029_v32 = vadd.f32 %v1028_v50, %v1009_v27  ;;  %v1392_v29 = vld [vmem:[#allocation5 + $0x308] sm:$0xff] }
 0x1a2   :  { %1481 = vmatpush.msra.mxu2 %v1365_v33  ;;  %v1370_v33 = vld [vmem:[#allocation5 + $0x258] sm:$0xff] }
 0x1a3   :  { %1443 = vmatpush.msra.mxu0 %v1297_v47  ;;  %1463 = vmatpush.msra.mxu1 %v1329_v57  ;;  %v1409_v47 = vld [vmem:[#allocation5 + $0x390] sm:$0xff]  ;;  %v1300_v57 = vld [vmem:[#allocation5 + $0x28] sm:$0xff] }
 0x1a4   :  { %1482 = vmatpush.msra.mxu2 %v1363_v58  ;;  %v1332_v58 = vld [vmem:[#allocation5 + $0x128] sm:$0xff]  ;;  %1495 = vmatpush.msra.mxu3 %v1409_v47 }
 0x1a5   :  { %1444 = vmatpush.msra.mxu0 %v1295_v59  ;;  %1464 = vmatpush.msra.mxu1 %v1327_v60  ;;  %v1048_v59 = vpop.f32.mrf.mxu3 }
 0x1a6   :  { %1445 = vmatmul.f32.vlgmr.msra.gmra.mxu0 %v1291_v61  ;;  %1465 = vmatmul.f32.vlgmr.msra.gmra.mxu1 %v1292_v62  ;;  %v1049_v60 = vadd.f32 %v1048_v59, %v1029_v32 }
 0x1a7   :  { %1509 = vmatpush.msrb.mxu0 %v1326_v63  ;;  %1529 = vmatpush.msrb.mxu1 %v1358_v54  ;;  %v1368_v63 = vld [vmem:[#allocation5 + $0x248] sm:$0xff]  ;;  %v1407_v54 = vld [vmem:[#allocation5 + $0x380] sm:$0xff] }
 0x1a8   :  { %1483 = vmatpush.msra.mxu2 %v1361_v0  ;;  %v1298_v0 = vld [vmem:[#allocation5 + $0x18] sm:$0xff]  ;;  %1496 = vmatpush.msra.mxu3 %v1407_v54 }
 0x1a9   :  { %1510 = vmatpush.msrb.mxu0 %v1324_v4  ;;  %1530 = vmatpush.msrb.mxu1 %v1356_v5  ;;  %v1330_v4 = vld [vmem:[#allocation5 + $0x118] sm:$0xff] }
 0x1aa   :  { %1484 = vmatpush.msra.mxu2 %v1359_v6  ;;  %v1366_v6 = vld [vmem:[#allocation5 + $0x238] sm:$0xff] }
 0x1ab   :  { %1511 = vmatpush.msrb.mxu0 %v1322_v7  ;;  %1531 = vmatpush.msrb.mxu1 %v1354_v8  ;;  %v1405_v7 = vld [vmem:[#allocation5 + $0x370] sm:$0xff]  ;;  %v1296_v8 = vld [vmem:[#allocation5 + $0x8] sm:$0xff]  ;;  %v1622_v54 = vld [vmem:[#allocation7 + $0xf8] sm:$0xff] }
 0x1ac   :  { %1549 = vmatpush.msrb.mxu2 %v1390_v11  ;;  %v1328_v11 = vld [vmem:[#allocation5 + $0x108] sm:$0xff]  ;;  %1497 = vmatpush.msra.mxu3 %v1405_v7  ;;  %v1619_v7 = vld [vmem:[#allocation7 + $0xe0] sm:$0xff] }
 0x1ad   :  { %1512 = vmatpush.msrb.mxu0 %v1320_v10  ;;  %1532 = vmatpush.msrb.mxu1 %v1352_v12 }
 0x1ae   :  { %1550 = vmatpush.msrb.mxu2 %v1388_v13  ;;  %v1364_v13 = vld [vmem:[#allocation5 + $0x228] sm:$0xff] }
 0x1af   :  { %1513 = vmatpush.msrb.mxu0 %v1318_v14  ;;  %1533 = vmatpush.msrb.mxu1 %v1350_v15  ;;  %v1403_v14 = vld [vmem:[#allocation5 + $0x360] sm:$0xff] }
 0x1b0   :  { %1551 = vmatpush.msrb.mxu2 %v1386_v17  ;;  %1498 = vmatpush.msra.mxu3 %v1403_v14  ;;  %v1616_v14 = vld [vmem:[#allocation7 + $0xc8] sm:$0xff] }
 0x1b1   :  { %1514 = vmatpush.msrb.mxu0 %v1316_v18  ;;  %1534 = vmatpush.msrb.mxu1 %v1348_v20  ;;  %v1362_v18 = vld [vmem:[#allocation5 + $0x218] sm:$0xff]  ;;  %v1401_v20 = vld [vmem:[#allocation5 + $0x350] sm:$0xff] }
 0x1b2   :  { %1552 = vmatpush.msrb.mxu2 %v1384_v23  ;;  %1499 = vmatpush.msra.mxu3 %v1401_v20  ;;  %v1614_v20 = vld [vmem:[#allocation7 + $0xb8] sm:$0xff] }
 0x1b3   :  { %1515 = vmatpush.msrb.mxu0 %v1314_v24  ;;  %1535 = vmatpush.msrb.mxu1 %v1346_v30  ;;  %v1360_v24 = vld [vmem:[#allocation5 + $0x208] sm:$0xff]  ;;  %v1399_v30 = vld [vmem:[#allocation5 + $0x340] sm:$0xff] }
 0x1b4   :  { %1553 = vmatpush.msrb.mxu2 %v1382_v3  ;;  %v1397_v3 = vld [vmem:[#allocation5 + $0x330] sm:$0xff]  ;;  %1500 = vmatpush.msra.mxu3 %v1399_v30  ;;  %v1594_v30 = vld [vmem:[#allocation7 + $0x18] sm:$0xff] }
 0x1b5   :  { %1516 = vmatpush.msrb.mxu0 %v1312_v31  ;;  %1536 = vmatpush.msrb.mxu1 %v1344_v1  ;;  %v1420_v1 = vld [vmem:[#allocation5 + $0x3e8] sm:$0xff] }
 0x1b6   :  { %1554 = vmatpush.msrb.mxu2 %v1380_v35  ;;  %1501 = vmatpush.msra.mxu3 %v1397_v3  ;;  %v1418_v35 = vld [vmem:[#allocation5 + $0x3d8] sm:$0xff]  ;;  %v1613_v3 = vld [vmem:[#allocation7 + $0xb0] sm:$0xff] }
 0x1b7   :  { %1517 = vmatpush.msrb.mxu0 %v1310_v2  ;;  %1537 = vmatpush.msrb.mxu1 %v1342_v9  ;;  %v1416_v2 = vld [vmem:[#allocation5 + $0x3c8] sm:$0xff]  ;;  %v1414_v9 = vld [vmem:[#allocation5 + $0x3b8] sm:$0xff] }
 0x1b8   :  { %1555 = vmatpush.msrb.mxu2 %v1378_v38  ;;  %v1068_v5 = vpop.f32.mrf.mxu0  ;;  %1502 = vmatpush.msra.mxu3 %v1395_v55  ;;  %v1410_v38 = vld [vmem:[#allocation5 + $0x398] sm:$0xff]  ;;  %v1612_v55 = vld [vmem:[#allocation7 + $0xa8] sm:$0xff] }
 0x1b9   :  { %1518 = vmatpush.msrb.mxu0 %v1308_v40  ;;  %1538 = vmatpush.msrb.mxu1 %v1340_v41  ;;  %v1069_v10 = vadd.f32 %v1068_v5, %v1049_v60  ;;  %v1404_v40 = vld [vmem:[#allocation5 + $0x368] sm:$0xff]  ;;  %v1402_v41 = vld [vmem:[#allocation5 + $0x358] sm:$0xff] }
 0x1ba   :  { %1556 = vmatpush.msrb.mxu2 %v1376_v43  ;;  %1503 = vmatpush.msra.mxu3 %v1393_v56  ;;  %v1398_v43 = vld [vmem:[#allocation5 + $0x338] sm:$0xff]  ;;  %v1620_v5 = vld [vmem:[#allocation7 + $0xe8] sm:$0xff]  ;;  %v1591_v56 = vld [vmem:[#allocation7] sm:$0xff] }
 0x1bb   :  { %1519 = vmatpush.msrb.mxu0 %v1306_v45  ;;  %1539 = vmatpush.msrb.mxu1 %v1338_v46  ;;  %v621_v45 = vperm.slane %v2040_v16, 4  ;;  %v1394_v46 = vld [vmem:[#allocation5 + $0x318] sm:$0xff] }
 0x1bc   :  { %1557 = vmatpush.msrb.mxu2 %v1374_v21  ;;  %v1606_v60 = vld [vmem:[#allocation7 + $0x78] sm:$0xff] }
 0x1bd   :  { %1520 = vmatpush.msrb.mxu0 %v1304_v49  ;;  %1540 = vmatpush.msrb.mxu1 %v1336_v25  ;;  %v629_v21 = vperm.slane %v621_v45, 0 }
 0x1be   :  { %1558 = vmatpush.msrb.mxu2 %v1372_v51 }
 0x1bf   :  { %1521 = vmatpush.msrb.mxu0 %v1302_v52  ;;  %1541 = vmatpush.msrb.mxu1 %v1334_v53  ;;  %v1088_v12 = vpop.f32.mrf.mxu1 }
 0x1c0   :  { %1559 = vmatpush.msrb.mxu2 %v1370_v33  ;;  %v1089_v15 = vadd.f32 %v1088_v12, %v1069_v10  ;;  %v1108_v17 = vpop.f32.mrf.mxu2  ;;  %v1601_v10 = vld [vmem:[#allocation7 + $0x50] sm:$0xff] }
 0x1c1   :  { %1522 = vmatpush.msrb.mxu0 %v1300_v57  ;;  %1542 = vmatpush.msrb.mxu1 %v1332_v58  ;;  %v1617_v12 = vld [vmem:[#allocation7 + $0xd0] sm:$0xff] }
 0x1c2   :  { %1560 = vmatpush.msrb.mxu2 %v1368_v63  ;;  %v1109_v22 = vadd.f32 %v1108_v17, %v1089_v15  ;;  %v1605_v63 = vld [vmem:[#allocation7 + $0x70] sm:$0xff]  ;;  %v1599_v15 = vld [vmem:[#allocation7 + $0x40] sm:$0xff] }
 0x1c3   :  { %1523 = vmatpush.msrb.mxu0 %v1298_v0  ;;  %1543 = vmatpush.msrb.mxu1 %v1330_v4  ;;  %v1128_v23 = vpop.f32.mrf.mxu3  ;;  %v1604_v0 = vld [vmem:[#allocation7 + $0x68] sm:$0xff]  ;;  %v1621_v4 = vld [vmem:[#allocation7 + $0xf0] sm:$0xff]  ;;  %v1615_v17 = vld [vmem:[#allocation7 + $0xc0] sm:$0xff] }
 0x1c4   :  { %1561 = vmatpush.msrb.mxu2 %v1366_v6  ;;  %v1129_v19 = vadd.f32 %v1128_v23, %v1109_v22  ;;  %v1603_v6 = vld [vmem:[#allocation7 + $0x60] sm:$0xff]  ;;  %v1597_v22 = vld [vmem:[#allocation7 + $0x30] sm:$0xff]  ;;  %v1596_v23 = vld [vmem:[#allocation7 + $0x28] sm:$0xff] }
 0x1c5   :  { %1524 = vmatpush.msrb.mxu0 %v1296_v8  ;;  %1544 = vmatpush.msrb.mxu1 %v1328_v11  ;;  %v1602_v8 = vld [vmem:[#allocation7 + $0x58] sm:$0xff] }
 0x1c6   :  { %1525 = vmatmul.f32.vlgmr.msrb.gmra.mxu0 %v1291_v61  ;;  %1545 = vmatmul.f32.vlgmr.msrb.gmra.mxu1 %v1292_v62  ;;  %v1293_v31 = vmax.f32 %v1129_v19, 0.0  ;;  %v1391_v61 = vld [vmem:[#allocation5 + $0x300] sm:$0xff]  ;;  %v1422_v62 = vld [vmem:[#allocation5 + $0x3f8] sm:$0xff]  ;;  %v1593_v19 = vld [vmem:[#allocation7 + $0x10] sm:$0xff] }
 0x1c7   :  { %1562 = vmatpush.msrb.mxu2 %v1364_v13  ;;  %1504 = vmatpush.msra.mxu3 %v1391_v61  ;;  %v1618_v11 = vld [vmem:[#allocation7 + $0xd8] sm:$0xff]  ;;  %v1600_v13 = vld [vmem:[#allocation7 + $0x48] sm:$0xff]  ;;  %v1611_v61 = vld [vmem:[#allocation7 + $0xa0] sm:$0xff] }
 0x1c8   :  { %1485 = vmatmul.f32.vlgmr.msra.gmra.mxu2 %v1293_v31  ;;  %1624 = vmatpush.msra.mxu0 %v1606_v60 }
 0x1c9   :  { %1563 = vmatpush.msrb.mxu2 %v1362_v18  ;;  %1569 = vmatpush.msrb.mxu3 %v1422_v62  ;;  %v1598_v18 = vld [vmem:[#allocation7 + $0x38] sm:$0xff] }
 0x1ca   :  { %1644 = vmatpush.msra.mxu1 %v1622_v54  ;;  %1625 = vmatpush.msra.mxu0 %v1605_v63  ;;  %v1610_v62 = vld [vmem:[#allocation7 + $0x98] sm:$0xff]  ;;  %v1669_v63 = vperm.slane %v2006_v28, 3 }
 0x1cb   :  { %1564 = vmatpush.msrb.mxu2 %v1360_v24  ;;  %1570 = vmatpush.msrb.mxu3 %v1420_v1  ;;  %v1595_v24 = vld [vmem:[#allocation7 + $0x20] sm:$0xff]  ;;  %v1609_v1 = vld [vmem:[#allocation7 + $0x90] sm:$0xff] }
 0x1cc   :  { %1645 = vmatpush.msra.mxu1 %v1621_v4  ;;  %1626 = vmatpush.msra.mxu0 %v1604_v0 }
 0x1cd   :  { %1571 = vmatpush.msrb.mxu3 %v1418_v35  ;;  %v1608_v35 = vld [vmem:[#allocation7 + $0x88] sm:$0xff] }
 0x1ce   :  { %1646 = vmatpush.msra.mxu1 %v1620_v5  ;;  %1627 = vmatpush.msra.mxu0 %v1603_v6 }
 0x1cf   :  { %1572 = vmatpush.msrb.mxu3 %v1416_v2  ;;  %v1607_v2 = vld [vmem:[#allocation7 + $0x80] sm:$0xff] }
 0x1d0   :  { %1565 = vmatmul.f32.vlgmr.msrb.gmra.mxu2 %v1293_v31  ;;  %1647 = vmatpush.msra.mxu1 %v1619_v7  ;;  %v1592_v31 = vld [vmem:[#allocation7 + $0x8] sm:$0xff] }
 0x1d1   :  { %1573 = vmatpush.msrb.mxu3 %v1414_v9  ;;  %1628 = vmatpush.msra.mxu0 %v1602_v8  ;;  %v1423_v9 = vperm.slane %v2006_v28, 1 }
 0x1d2   :  { %1648 = vmatpush.msra.mxu1 %v1618_v11 }
 0x1d3   :  { %1574 = vmatpush.msrb.mxu3 %v1412_v36  ;;  %1629 = vmatpush.msra.mxu0 %v1601_v10  ;;  %v1427_v36 = vperm.slane %v1423_v9, 1 }
 0x1d4   :  { %1649 = vmatpush.msra.mxu1 %v1617_v12 }
 0x1d5   :  { %1575 = vmatpush.msrb.mxu3 %v1410_v38  ;;  %1630 = vmatpush.msra.mxu0 %v1600_v13 }
 0x1d6   :  { %1650 = vmatpush.msra.mxu1 %v1616_v14 }
 0x1d7   :  { %1576 = vmatpush.msrb.mxu3 %v1408_v34  ;;  %1631 = vmatpush.msra.mxu0 %v1599_v15 }
 0x1d8   :  { %1651 = vmatpush.msra.mxu1 %v1615_v17 }
 0x1d9   :  { %1577 = vmatpush.msrb.mxu3 %v1406_v39  ;;  %1632 = vmatpush.msra.mxu0 %v1598_v18  ;;  %v1424_v39 = vperm.slane %v2006_v28, 5 }
 0x1da   :  { %1652 = vmatpush.msra.mxu1 %v1614_v20 }
 0x1db   :  { %1578 = vmatpush.msrb.mxu3 %v1404_v40  ;;  %1633 = vmatpush.msra.mxu0 %v1597_v22 }
 0x1dc   :  { %1653 = vmatpush.msra.mxu1 %v1613_v3 }
 0x1dd   :  { %1579 = vmatpush.msrb.mxu3 %v1402_v41  ;;  %1634 = vmatpush.msra.mxu0 %v1596_v23 }
 0x1de   :  { %1654 = vmatpush.msra.mxu1 %v1612_v55 }
 0x1df   :  { %1580 = vmatpush.msrb.mxu3 %v1400_v42  ;;  %1635 = vmatpush.msra.mxu0 %v1595_v24 }
 0x1e0   :  { %1655 = vmatpush.msra.mxu1 %v1611_v61 }
 0x1e1   :  { %1581 = vmatpush.msrb.mxu3 %v1398_v43  ;;  %1636 = vmatpush.msra.mxu0 %v1594_v30  ;;  %v1428_v43 = vperm.slane %v1424_v39, 1 }
 0x1e2   :  { %1656 = vmatpush.msra.mxu1 %v1610_v62 }
 0x1e3   :  { %1582 = vmatpush.msrb.mxu3 %v1396_v44  ;;  %1637 = vmatpush.msra.mxu0 %v1593_v19 }
 0x1e4   :  { %1657 = vmatpush.msra.mxu1 %v1609_v1 }
 0x1e5   :  { %1583 = vmatpush.msrb.mxu3 %v1394_v46  ;;  %1638 = vmatpush.msra.mxu0 %v1592_v31 }
 0x1e6   :  { %1658 = vmatpush.msra.mxu1 %v1608_v35 }
 0x1e7   :  { %1584 = vmatpush.msrb.mxu3 %v1392_v29  ;;  %1639 = vmatpush.msra.mxu0 %v1591_v56 }
 0x1e8   :  { %1659 = vmatpush.msra.mxu1 %v1607_v2 }
 0x1f5   :  { %v1148_v48 = vpop.f32.mrf.mxu0 }
 0x1f6   :  { %v1149_v49 = vadd.f32 %v1148_v48, %v629_v21  ;;  %v1168_v25 = vpop.f32.mrf.mxu1 }
 0x1f8   :  { %v1169_v26 = vadd.f32 %v1168_v25, %v1149_v49 }
 0x1f9   :  { %v1188_v27 = vpop.f32.mrf.mxu2 }
 0x1fa   :  { %v1189_v50 = vadd.f32 %v1188_v27, %v1169_v26  ;;  %v1208_v51 = vpop.f32.mrf.mxu3 }
 0x1fc   :  { %v1209_v37 = vadd.f32 %v1208_v51, %v1189_v50 }
 0x205   :  { %v1228_v52 = vpop.f32.mrf.mxu0 }
 0x206   :  { %v1229_v53 = vadd.f32 %v1228_v52, %v1209_v37  ;;  %v1668_v52 = vld [vmem:[#allocation8 + $0x18] sm:$0xff] }
 0x207   :  { %v1248_v32 = vpop.f32.mrf.mxu1  ;;  %1686 = vmatpush.msra.mxu2 %v1668_v52 }
 0x208   :  { %v1249_v33 = vadd.f32 %v1248_v32, %v1229_v53  ;;  %v1667_v53 = vld [vmem:[#allocation8 + $0x10] sm:$0xff]  ;;  %v1666_v32 = vld [vmem:[#allocation8 + $0x8] sm:$0xff] }
 0x209   :  { %v1268_v47 = vpop.f32.mrf.mxu2  ;;  %1687 = vmatpush.msra.mxu2 %v1667_v53 }
 0x20a   :  { %v1269_v16 = vadd.f32 %v1268_v47, %v1249_v33  ;;  %v1665_v33 = vld [vmem:[#allocation8] sm:$0xff]  ;;  %v1623_v47 = vperm.slane %v2006_v28, 2 }
 0x20b   :  { %1688 = vmatpush.msra.mxu2 %v1666_v32 }
 0x20c   :  { %v1288_v57 = vpop.f32.mrf.mxu3 }
 0x20d   :  { %v1289_v58 = vadd.f32 %v1288_v57, %v1269_v16  ;;  %1689 = vmatpush.msra.mxu2 %v1665_v33 }
 0x20f   :  { %v1294_v59 = vmax.f32 %v1289_v58, 0.0 }
 0x211   :  { %1505 = vmatmul.f32.vlgmr.msra.gmra.mxu3 %v1294_v59 }
 0x219   :  { %1585 = vmatmul.f32.vlgmr.msrb.gmra.mxu3 %v1294_v59 }
 0x223   :  { %v1446_v38 = vpop.f32.mrf.mxu0  ;;  %v1466_v41 = vpop.f32.mrf.mxu1 }
 0x224   :  { %v1447_v34 = vadd.f32 %v1446_v38, %v1427_v36 }
 0x226   :  { %v1467_v42 = vadd.f32 %v1466_v41, %v1447_v34 }
 0x243   :  { %v1526_v44 = vpop.f32.mrf.mxu0  ;;  %v1546_v49 = vpop.f32.mrf.mxu1 }
 0x244   :  { %v1527_v29 = vadd.f32 %v1526_v44, %v1428_v43 }
 0x246   :  { %v1547_v26 = vadd.f32 %v1546_v49, %v1527_v29 }
 0x24b   :  { %v1486_v40 = vpop.f32.mrf.mxu2 }
 0x24c   :  { %v1487_v45 = vadd.f32 %v1486_v40, %v1467_v42 }
 0x253   :  { %v1566_v25 = vpop.f32.mrf.mxu2 }
 0x254   :  { %v1567_v27 = vadd.f32 %v1566_v25, %v1547_v26 }
 0x294   :  { %v1506_v46 = vpop.f32.mrf.mxu3 }
 0x295   :  { %v1507_v21 = vadd.f32 %v1506_v46, %v1487_v45 }
 0x297   :  { %v1589_v48 = vmax.f32 %v1507_v21, 0.0 }
 0x299   :  { %1640 = vmatmul.f32.vlgmr.msra.gmra.mxu0 %v1589_v48 }
 0x29c   :  { %v1586_v50 = vpop.f32.mrf.mxu3 }
 0x29d   :  { %v1587_v51 = vadd.f32 %v1586_v50, %v1567_v27 }
 0x29f   :  { %v1590_v37 = vmax.f32 %v1587_v51, 0.0 }
 0x2a1   :  { %1660 = vmatmul.f32.vlgmr.msra.gmra.mxu1 %v1590_v37 }
 0x316   :  { %v1641_v16 = vpop.f32.mrf.mxu0 }
 0x317   :  { %v1642_v57 = vadd.f32 %v1641_v16, %v1623_v47 }
 0x31e   :  { %v1661_v58 = vpop.f32.mrf.mxu1 }
 0x31f   :  { %v1662_v59 = vadd.f32 %v1661_v58, %v1642_v57 }
 0x321   :  { %v1664_v60 = vmax.f32 %v1662_v59, 0.0 }
 0x323   :  { %1715 = vmatmul.msk.f32.vlgmr.msra.gmra.mxu2 %vm1670_vm0, %v1664_v60 }
 0x3a6   :  { %v1691_v54 = vpop.f32.mrf.mxu2 }
 0x3a7   :  { %v1692_v0 = vadd.f32 %v1691_v54, %v1669_v63 }
 0x3a9   :  { %1695 = vst.msk [vmem:[#allocation11] sm:$0x3] %vm1694_vm1, %v1692_v0 }
 0x3aa   :  { %1706 = dma.vmem_to_hbm [thread:$0]  %s1702_s27, 32, %s1704_s30, [#allocation4]  }
 0x3ab   :  { %1886 = dma.done.wait [#allocation4], 32  }
 0x3ac   :  { %1887 = vsyncadd [#allocation4], 4294967264 }
 0x3ad   :  { %1711 = vsyncpa [#allocation3], 1 }
 0x3ae   :  { %1712 = vsyncpa [#allocation6], 1 }
 0x3af   :  { %1713 = vsyncpa [#allocation9], 1 }
 0x3b0   :  { %1714 = vsyncpa [#allocation4], 1 }

</bundles_post_ra>
